<compile_context>
chip_gen: v7x
topology: tpu7x:2x2x1
jax: 0.10.0
libtpu: 0.0.40
codegen_flags: <defaults>
</compile_context>

<pallas_src>
from functools import partial

import numpy as np
import jax
import jax.numpy as jnp
from jax import lax
from jax.experimental import pallas as pl
from jax.experimental.pallas import tpu as pltpu


# ---------------------------------------------------------------------------
# Fused pair-construction + g-MLP + Sum(dim=1) + f-MLP kernel.
# One grid step per batch element; no scratch, no pl.when.
#
# Refs (per grid step / batch element b):
#   conv_tr_ref : (1, P, HP)   conv features (+coords), lane-padded, f32
#   lstm_ref    : (1, 1, HP)   lstm embedding, lane-padded, f32
#   wslab_ref   : (HP, 9*HP)   bf16 weight slab, lane-concatenated:
#                              [W1a|W1b|W1c|W2|W3|W4|FW1|FW2|FW3]
#   bpack_ref   : (8, HP)      f32 biases [b1,b2,b3,b4,fb1,fb2,fb3,0]
#   out_ref     : (1, 1, HP)   f(sum_pairs g(...)) for this batch element
#
# The (B, P^2, n_concat) concat tensor is never materialized: since
#     xcat[b, i*P+j] = [conv_tr[b, j], conv_tr[b, i], lstm[b]],
# the first g layer factorizes as
#     AB = conv_tr @ [W1a|W1b]      (P, 2*HP)   one 256-wide MXU dot
#     c  = lstm    @ W1c + b1       (1, HP)
#     h[i*P+j] = relu(A[j] + Bm[i] + c)
# ---------------------------------------------------------------------------
def _fused_pair_g_f_kernel(conv_tr_ref, lstm_ref, wslab_ref, bpack_ref,
                           out_ref, *, n_pair, hp):
    f32 = jnp.float32
    bf16 = jnp.bfloat16

    def w(k, n=1):                        # static lane-slice of the bf16 slab
        return wslab_ref[:, k * hp:(k + n) * hp]

    def bias(k):                          # static row of the f32 bias slab
        return bpack_ref[k:k + 1, :]      # (1, HP)

    # ---- g layer 1, factorized (bf16 operands, f32 accumulation) ----------
    ctr = conv_tr_ref[0].astype(bf16)                                 # (P, HP)
    ab = jnp.dot(ctr, w(0, 2), preferred_element_type=f32)            # (P, 2HP)
    a, bm = ab[:, :hp], ab[:, hp:]          # A = ctr@W1a ; Bm = ctr@W1b
    c = jnp.dot(lstm_ref[0].astype(bf16), w(2),
                preferred_element_type=f32) + bias(0)                 # (1, HP)

    # h[i, j] = relu(A[j] + Bm[i] + c); one 3-D broadcasted add + one reshape
    # (layout-free when n_pair % 8 == 0, which holds for the 4x4 conv map).
    h = jnp.maximum(a[None, :, :] + bm[:, None, :] + c[None, :, :], 0.0)
    h = h.reshape(n_pair * n_pair, hp)                                # (P^2,HP)

    # ---- g layers 2..4: lane-dense (P^2,128)x(128,128) GEMMs --------------
    for k in range(3, 6):
        h = jnp.maximum(
            jnp.dot(h.astype(bf16), w(k), preferred_element_type=f32)
            + bias(k - 2), 0.0)

    # ---- Sum over the pair axis (f32) --------------------------------------
    y = jnp.sum(h, axis=0, keepdims=True)                             # (1, HP)

    # ---- f MLP (nn.Dropout == eval-mode identity) --------------------------
    y = jnp.maximum(jnp.dot(y.astype(bf16), w(6),
                            preferred_element_type=f32) + bias(4), 0.0)
    y = jnp.maximum(jnp.dot(y.astype(bf16), w(7),
                            preferred_element_type=f32) + bias(5), 0.0)
    y = jnp.dot(y.astype(bf16), w(8), preferred_element_type=f32) + bias(6)

    out_ref[0] = y.astype(out_ref.dtype)


def fused_pair_g_f(conv_tr_p, lstm_p, wslab, bpack, *, n_pair, hp):
    """conv_tr_p: (B, P, HP) f32; lstm_p: (B, 1, HP) f32; returns (B, 1, HP)."""
    bsz = conv_tr_p.shape[0]
    kernel = partial(_fused_pair_g_f_kernel, n_pair=n_pair, hp=hp)

    # Advisory cost hint (review item 10): lets XLA overlap neighbouring ops
    # with the kernel's initial ~300 KiB weight-slab DMA.
    flops = 2 * bsz * (n_pair * hp * (2 * hp)             # layer-1 AB dot
                       + hp * hp                          # lstm @ W1c
                       + 3 * n_pair * n_pair * hp * hp    # g layers 2-4
                       + 3 * hp * hp)                     # f MLP
    bytes_accessed = (wslab.size * wslab.dtype.itemsize + bpack.size * 4
                      + conv_tr_p.size * 4 + lstm_p.size * 4 + bsz * hp * 4)

    return pl.pallas_call(
        kernel,
        out_shape=jax.ShapeDtypeStruct((bsz, 1, hp), jnp.float32),
        # One grid step per batch element (pair-tile axis collapsed).  Batch
        # is kept as a leading "parallel" axis so v7x can split it across its
        # two TensorCores; switch to pltpu.CORE_PARALLEL if a v7x profile
        # shows a single TC active.
        grid=(bsz,),
        in_specs=[
            pl.BlockSpec((1, n_pair, hp), lambda b: (b, 0, 0)),   # conv_tr
            pl.BlockSpec((1, 1, hp), lambda b: (b, 0, 0)),        # lstm row
            # Constant index_maps -> the weight/bias slabs are DMA'd once per
            # launch.  (pl.Buffered(1) could drop their second pipeline
            # buffer, ~300 KiB; left at default for jax-version portability.)
            pl.BlockSpec((hp, 9 * hp), lambda b: (0, 0)),         # bf16 weights
            pl.BlockSpec((8, hp), lambda b: (0, 0)),              # f32 biases
        ],
        out_specs=pl.BlockSpec((1, 1, hp), lambda b: (b, 0, 0)),
        compiler_params=pltpu.CompilerParams(
            dimension_semantics=("parallel",)),
        cost_estimate=pl.CostEstimate(flops=flops, transcendentals=0,
                                      bytes_accessed=bytes_accessed),
    )(conv_tr_p, lstm_p, wslab, bpack)


# ---------------------------------------------------------------------------
# One-time weight packing (outside the jitted forward — review item 9).
# ---------------------------------------------------------------------------
def pack_relnet_params(params):
    (w1, b1), (w2, b2), (w3, b3), (w4, b4) = params["g"]
    (fw1, fb1), (fw2, fb2), (fw3, fb3) = params["f"]
    n_channel = params["conv"][-1][0].shape[0]
    c2 = n_channel + 2
    n_concat = w1.shape[0]
    lstm_hidden = n_concat - 2 * c2
    mlp_hidden = w1.shape[1]
    classes = fw3.shape[1]
    assert n_concat == 2 * c2 + lstm_hidden
    # lane-dense width (everything padded to a multiple of 128 lanes)
    hp = 128 * max(1, -(-max(mlp_hidden, classes, c2, lstm_hidden) // 128))

    f32 = jnp.float32

    def pad2(w):
        return jnp.zeros((hp, hp), f32).at[:w.shape[0], :w.shape[1]].set(
            w.astype(f32))

    def pad1(b):
        return jnp.zeros((hp,), f32).at[:b.shape[0]].set(b.astype(f32))

    # Split W1 by the [conv1 | conv2 | h_tile] concat structure, then pack all
    # nine weight matrices lane-concatenated into ONE bf16 slab; columns
    # [0:2*HP] form the 256-wide RHS [W1a|W1b] used by the prologue dot.
    w1a, w1b, w1c = w1[:c2], w1[c2:2 * c2], w1[2 * c2:]
    wslab = jnp.concatenate(
        [pad2(w) for w in (w1a, w1b, w1c, w2, w3, w4, fw1, fw2, fw3)],
        axis=1).astype(jnp.bfloat16)                                # (HP, 9*HP)
    bpack = jnp.stack([pad1(b) for b in (b1, b2, b3, b4, fb1, fb2, fb3)]
                      + [jnp.zeros((hp,), f32)])                    # (8, HP)

    return dict(conv=params["conv"], coords=params["coords"],
                wslab=wslab, bpack=bpack,
                c2=c2, lstm_hidden=lstm_hidden, classes=classes, hp=hp)


# ---------------------------------------------------------------------------
# Full forward (matches LRPViewOfRelationNetwork.forward semantics).
# ---------------------------------------------------------------------------
def lrp_relnet_forward(packed, image, lstm_embed):
    # Conv stack: tiny (3->8->8 ch on 16x16), left to XLA — a Pallas GEMM here
    # is pure launch overhead.
    x = image
    for (w, b) in packed["conv"]:
        y = lax.conv_general_dilated(
            x, w, (2, 2), ((1, 1), (1, 1)),
            dimension_numbers=("NCHW", "OIHW", "NCHW"))
        x = jnp.maximum(y + b[None, :, None, None], 0.0)
    bsz, n_channel, conv_h, conv_w = x.shape
    n_pair = conv_h * conv_w
    c2, hp = packed["c2"], packed["hp"]
    assert c2 == n_channel + 2

    # coords concat on channel dim, then conv_tr = conv.view(B,C,-1).permute(0,2,1)
    coords = jnp.broadcast_to(packed["coords"], (bsz, 2, conv_h, conv_w))
    conv_cat = jnp.concatenate([x, coords], axis=1)
    conv_tr = conv_cat.reshape(bsz, c2, n_pair).transpose(0, 2, 1)   # (B, P, C2)
    lstm = jnp.transpose(lstm_embed, (1, 0, 2))                      # (B, 1, L)

    # Lane-pad activations to HP so every kernel GEMM / store is lane-dense.
    conv_tr_p = jnp.zeros((bsz, n_pair, hp), jnp.float32
                          ).at[:, :, :c2].set(conv_tr.astype(jnp.float32))
    lstm_p = jnp.zeros((bsz, 1, hp), jnp.float32
                       ).at[:, :, :packed["lstm_hidden"]].set(
                           lstm.astype(jnp.float32))

    out = fused_pair_g_f(conv_tr_p, lstm_p, packed["wslab"], packed["bpack"],
                         n_pair=n_pair, hp=hp)
    return out[:, 0, :packed["classes"]]


# ---------------------------------------------------------------------------
# Pure-JAX f32 reference for validation (materializes xcat exactly like torch).
# ---------------------------------------------------------------------------
def reference_forward(params, image, lstm_embed):
    x = image
    for (w, b) in params["conv"]:
        y = lax.conv_general_dilated(
            x, w, (2, 2), ((1, 1), (1, 1)),
            dimension_numbers=("NCHW", "OIHW", "NCHW"))
        x = jnp.maximum(y + b[None, :, None, None], 0.0)
    bsz, n_channel, conv_h, conv_w = x.shape
    n_pair = conv_h * conv_w
    lstm_hidden = lstm_embed.shape[-1]
    h_tile = jnp.broadcast_to(
        jnp.transpose(lstm_embed, (1, 0, 2)), (bsz, n_pair * n_pair, lstm_hidden))
    coords = jnp.broadcast_to(params["coords"], (bsz, 2, conv_h, conv_w))
    conv_cat = jnp.concatenate([x, coords], axis=1)
    c2 = n_channel + 2
    conv_tr = conv_cat.reshape(bsz, c2, n_pair).transpose(0, 2, 1)
    conv1 = jnp.broadcast_to(conv_tr[:, None, :, :], (bsz, n_pair, n_pair, c2)
                             ).reshape(bsz, n_pair * n_pair, c2)
    conv2 = jnp.broadcast_to(conv_tr[:, :, None, :], (bsz, n_pair, n_pair, c2)
                             ).reshape(bsz, n_pair * n_pair, c2)
    xcat = jnp.concatenate([conv1, conv2, h_tile], axis=2)
    n_concat = xcat.shape[-1]
    h = xcat.reshape(-1, n_concat)
    for (w, b) in params["g"]:
        h = jnp.maximum(h @ w + b, 0.0)
    mlp_hidden = h.shape[-1]
    g = h.reshape(bsz, n_pair * n_pair, mlp_hidden).sum(axis=1)
    (fw1, fb1), (fw2, fb2), (fw3, fb3) = params["f"]
    h = jnp.maximum(g @ fw1 + fb1, 0.0)
    h = jnp.maximum(h @ fw2 + fb2, 0.0)
    return h @ fw3 + fb3


# ---------------------------------------------------------------------------
# Deterministic synthetic parameters + example run.
# ---------------------------------------------------------------------------
def _init_linear(key, fan_in, fan_out):
    kw, kb = jax.random.split(key)
    lim = 1.0 / np.sqrt(fan_in)
    w = jax.random.uniform(kw, (fan_in, fan_out), jnp.float32, -lim, lim)
    b = jax.random.uniform(kb, (fan_out,), jnp.float32, -lim, lim)
    return w, b


def _init_conv(key, cin, cout, k):
    kw, kb = jax.random.split(key)
    lim = 1.0 / np.sqrt(cin * k * k)
    w = jax.random.uniform(kw, (cout, cin, k, k), jnp.float32, -lim, lim)
    b = jax.random.uniform(kb, (cout,), jnp.float32, -lim, lim)
    return w, b


def make_params(key, conv_hidden=8, lstm_hidden=32, mlp_hidden=32,
                classes=10, conv_hw=4):
    ks = jax.random.split(key, 16)
    n_concat = (conv_hidden + 2) * 2 + lstm_hidden
    conv = [
        _init_conv(ks[0], 3, conv_hidden, 3),
        _init_conv(ks[1], conv_hidden, conv_hidden, 3),
    ]
    g = [
        _init_linear(ks[2], n_concat, mlp_hidden),
        _init_linear(ks[3], mlp_hidden, mlp_hidden),
        _init_linear(ks[4], mlp_hidden, mlp_hidden),
        _init_linear(ks[5], mlp_hidden, mlp_hidden),
    ]
    f = [
        _init_linear(ks[6], mlp_hidden, mlp_hidden),
        _init_linear(ks[7], mlp_hidden, mlp_hidden),
        _init_linear(ks[8], mlp_hidden, classes),
    ]
    # coords buffer (deterministic normalized grid), shape (1, 2, conv_h, conv_w)
    lin = jnp.linspace(-1.0, 1.0, conv_hw, dtype=jnp.float32)
    ys, xs = jnp.meshgrid(lin, lin, indexing="ij")
    coords = jnp.stack([xs, ys])[None]
    return {"conv": conv, "g": g, "f": f, "coords": coords}


if __name__ == "__main__":
    key = jax.random.PRNGKey(0)
    k_img, k_lstm, k_param = jax.random.split(key, 3)

    B, CONV_HIDDEN, LSTM_HIDDEN, MLP_HIDDEN, CLASSES = 2, 8, 32, 32, 10
    SPATIAL = 16  # 16 -> 8 -> 4 after two stride-2 convs; n_pair = 16

    image = jax.random.normal(k_img, (B, 3, SPATIAL, SPATIAL), jnp.float32)
    lstm_embed = jax.random.normal(k_lstm, (1, B, LSTM_HIDDEN), jnp.float32)

    params = make_params(k_param, CONV_HIDDEN, LSTM_HIDDEN, MLP_HIDDEN,
                         CLASSES, conv_hw=SPATIAL // 4)
    packed = pack_relnet_params(params)   # one-time bf16 weight-slab packing

    fwd = jax.jit(partial(lrp_relnet_forward, packed))
    out = jax.block_until_ready(fwd(image, lstm_embed))

    ref = jax.block_until_ready(reference_forward(params, image, lstm_embed))

    out_np, ref_np = np.asarray(out), np.asarray(ref)
    assert out_np.shape == (B, CLASSES), out_np.shape
    # Kernel uses bf16 MXU operands (f32 accumulation and f32 pair-sum) vs the
    # pure-f32 reference -> tolerance loosened and scaled by output magnitude.
    atol = 5e-2 * max(1.0, float(np.max(np.abs(ref_np))))
    np.testing.assert_allclose(out_np, ref_np, rtol=5e-2, atol=atol)
    print("KERNEL_OK")
</pallas_src>

<mosaic_0001>
module attributes {stable_mosaic.version = 11 : i64} {
  func.func @_fused_pair_g_f_kernel(%arg0: i32, %arg1: memref<1x16x128xf32, #tpu.memory_space<vmem>>, %arg2: memref<1x1x128xf32, #tpu.memory_space<vmem>>, %arg3: memref<128x1152xbf16, #tpu.memory_space<vmem>>, %arg4: memref<8x128xf32, #tpu.memory_space<vmem>>, %arg5: memref<1x1x128xf32, #tpu.memory_space<vmem>>) attributes {dimension_semantics = [#tpu.dimension_semantics<parallel>], iteration_bounds = array<i64: 2>, scalar_prefetch = 0 : i64, scratch_operands = 0 : i64, tpu.core_type = #tpu.core_type<tc>, window_params = [{transform_indices = @transform_0, window_bounds = array<i64: 1, 16, 128>}, {transform_indices = @transform_1, window_bounds = array<i64: 1, 1, 128>}, {pipeline_mode = #tpu.pipeline_mode<synchronous>, transform_indices = @transform_2, window_bounds = array<i64: 128, 1152>}, {pipeline_mode = #tpu.pipeline_mode<synchronous>, transform_indices = @transform_3, window_bounds = array<i64: 8, 128>}, {transform_indices = @transform_4, window_bounds = array<i64: 1, 1, 128>}]} {
    %c0 = arith.constant 0 : index
    %c0_0 = arith.constant 0 : index
    %c0_1 = arith.constant 0 : index
    %0 = vector.load %arg1[%c0, %c0_0, %c0_1] : memref<1x16x128xf32, #tpu.memory_space<vmem>>, vector<1x16x128xf32>
    %1 = vector.shape_cast %0 : vector<1x16x128xf32> to vector<16x128xf32>
    %2 = arith.truncf %1 : vector<16x128xf32> to vector<16x128xbf16>
    %c0_2 = arith.constant 0 : index
    %c0_3 = arith.constant 0 : index
    %3 = vector.load %arg3[%c0_2, %c0_3] : memref<128x1152xbf16, #tpu.memory_space<vmem>>, vector<128x256xbf16>
    %cst = arith.constant dense<0.000000e+00> : vector<16x256xf32>
    %4 = tpu.matmul %2, %3, %cst {dimension_numbers = #tpu.dot_dimension_numbers<[1], [0], [0], [1], [0, 0, 1, 1], [], []>} : vector<16x128xbf16>, vector<128x256xbf16>, vector<16x256xf32> -> vector<16x256xf32>
    %5 = vector.extract_strided_slice %4 {offsets = [0, 0], sizes = [16, 128], strides = [1, 1]} : vector<16x256xf32> to vector<16x128xf32>
    %6 = vector.extract_strided_slice %4 {offsets = [0, 128], sizes = [16, 128], strides = [1, 1]} : vector<16x256xf32> to vector<16x128xf32>
    %c0_4 = arith.constant 0 : index
    %c0_5 = arith.constant 0 : index
    %c0_6 = arith.constant 0 : index
    %7 = vector.load %arg2[%c0_4, %c0_5, %c0_6] : memref<1x1x128xf32, #tpu.memory_space<vmem>>, vector<1x1x128xf32>
    %8 = vector.shape_cast %7 : vector<1x1x128xf32> to vector<1x128xf32>
    %9 = arith.truncf %8 : vector<1x128xf32> to vector<1x128xbf16>
    %c0_7 = arith.constant 0 : index
    %c256 = arith.constant 256 : index
    %10 = vector.load %arg3[%c0_7, %c256] : memref<128x1152xbf16, #tpu.memory_space<vmem>>, vector<128x128xbf16>
    %cst_8 = arith.constant dense<0.000000e+00> : vector<1x128xf32>
    %11 = tpu.matmul %9, %10, %cst_8 {dimension_numbers = #tpu.dot_dimension_numbers<[1], [0], [0], [1], [0, 0, 1, 1], [], []>} : vector<1x128xbf16>, vector<128x128xbf16>, vector<1x128xf32> -> vector<1x128xf32>
    %c0_9 = arith.constant 0 : index
    %c0_10 = arith.constant 0 : index
    %12 = vector.load %arg4[%c0_9, %c0_10] : memref<8x128xf32, #tpu.memory_space<vmem>>, vector<1x128xf32>
    %13 = arith.addf %11, %12 : vector<1x128xf32>
    %14 = vector.shape_cast %5 : vector<16x128xf32> to vector<1x16x128xf32>
    %15 = vector.shape_cast %6 : vector<16x128xf32> to vector<16x1x128xf32>
    %16 = vector.broadcast %14 : vector<1x16x128xf32> to vector<16x16x128xf32>
    %17 = vector.broadcast %15 : vector<16x1x128xf32> to vector<16x16x128xf32>
    %18 = arith.addf %16, %17 : vector<16x16x128xf32>
    %19 = vector.shape_cast %13 : vector<1x128xf32> to vector<1x1x128xf32>
    %20 = vector.broadcast %19 : vector<1x1x128xf32> to vector<16x16x128xf32>
    %21 = arith.addf %18, %20 : vector<16x16x128xf32>
    %cst_11 = arith.constant 0.000000e+00 : f32
    %22 = vector.broadcast %cst_11 : f32 to vector<16x16x128xf32>
    %23 = arith.maximumf %21, %22 : vector<16x16x128xf32>
    %24 = vector.shape_cast %23 : vector<16x16x128xf32> to vector<256x128xf32>
    %25 = arith.truncf %24 : vector<256x128xf32> to vector<256x128xbf16>
    %c0_12 = arith.constant 0 : index
    %c384 = arith.constant 384 : index
    %26 = vector.load %arg3[%c0_12, %c384] : memref<128x1152xbf16, #tpu.memory_space<vmem>>, vector<128x128xbf16>
    %cst_13 = arith.constant dense<0.000000e+00> : vector<256x128xf32>
    %27 = tpu.matmul %25, %26, %cst_13 {dimension_numbers = #tpu.dot_dimension_numbers<[1], [0], [0], [1], [0, 0, 1, 1], [], []>} : vector<256x128xbf16>, vector<128x128xbf16>, vector<256x128xf32> -> vector<256x128xf32>
    %c1 = arith.constant 1 : index
    %c0_14 = arith.constant 0 : index
    %28 = vector.load %arg4[%c1, %c0_14] : memref<8x128xf32, #tpu.memory_space<vmem>>, vector<1x128xf32>
    %29 = vector.broadcast %28 : vector<1x128xf32> to vector<256x128xf32>
    %30 = arith.addf %27, %29 : vector<256x128xf32>
    %cst_15 = arith.constant 0.000000e+00 : f32
    %31 = vector.broadcast %cst_15 : f32 to vector<256x128xf32>
    %32 = arith.maximumf %30, %31 : vector<256x128xf32>
    %33 = arith.truncf %32 : vector<256x128xf32> to vector<256x128xbf16>
    %c0_16 = arith.constant 0 : index
    %c512 = arith.constant 512 : index
    %34 = vector.load %arg3[%c0_16, %c512] : memref<128x1152xbf16, #tpu.memory_space<vmem>>, vector<128x128xbf16>
    %cst_17 = arith.constant dense<0.000000e+00> : vector<256x128xf32>
    %35 = tpu.matmul %33, %34, %cst_17 {dimension_numbers = #tpu.dot_dimension_numbers<[1], [0], [0], [1], [0, 0, 1, 1], [], []>} : vector<256x128xbf16>, vector<128x128xbf16>, vector<256x128xf32> -> vector<256x128xf32>
    %c2 = arith.constant 2 : index
    %c0_18 = arith.constant 0 : index
    %36 = vector.load %arg4[%c2, %c0_18] : memref<8x128xf32, #tpu.memory_space<vmem>>, vector<1x128xf32>
    %37 = vector.broadcast %36 : vector<1x128xf32> to vector<256x128xf32>
    %38 = arith.addf %35, %37 : vector<256x128xf32>
    %cst_19 = arith.constant 0.000000e+00 : f32
    %39 = vector.broadcast %cst_19 : f32 to vector<256x128xf32>
    %40 = arith.maximumf %38, %39 : vector<256x128xf32>
    %41 = arith.truncf %40 : vector<256x128xf32> to vector<256x128xbf16>
    %c0_20 = arith.constant 0 : index
    %c640 = arith.constant 640 : index
    %42 = vector.load %arg3[%c0_20, %c640] : memref<128x1152xbf16, #tpu.memory_space<vmem>>, vector<128x128xbf16>
    %cst_21 = arith.constant dense<0.000000e+00> : vector<256x128xf32>
    %43 = tpu.matmul %41, %42, %cst_21 {dimension_numbers = #tpu.dot_dimension_numbers<[1], [0], [0], [1], [0, 0, 1, 1], [], []>} : vector<256x128xbf16>, vector<128x128xbf16>, vector<256x128xf32> -> vector<256x128xf32>
    %c3 = arith.constant 3 : index
    %c0_22 = arith.constant 0 : index
    %44 = vector.load %arg4[%c3, %c0_22] : memref<8x128xf32, #tpu.memory_space<vmem>>, vector<1x128xf32>
    %45 = vector.broadcast %44 : vector<1x128xf32> to vector<256x128xf32>
    %46 = arith.addf %43, %45 : vector<256x128xf32>
    %cst_23 = arith.constant 0.000000e+00 : f32
    %47 = vector.broadcast %cst_23 : f32 to vector<256x128xf32>
    %48 = arith.maximumf %46, %47 : vector<256x128xf32>
    %cst_24 = arith.constant dense<0.000000e+00> : vector<128xf32>
    %49 = vector.multi_reduction <add>, %48, %cst_24 [0] : vector<256x128xf32> to vector<128xf32>
    %50 = vector.shape_cast %49 : vector<128xf32> to vector<1x128xf32>
    %51 = arith.truncf %50 : vector<1x128xf32> to vector<1x128xbf16>
    %c0_25 = arith.constant 0 : index
    %c768 = arith.constant 768 : index
    %52 = vector.load %arg3[%c0_25, %c768] : memref<128x1152xbf16, #tpu.memory_space<vmem>>, vector<128x128xbf16>
    %cst_26 = arith.constant dense<0.000000e+00> : vector<1x128xf32>
    %53 = tpu.matmul %51, %52, %cst_26 {dimension_numbers = #tpu.dot_dimension_numbers<[1], [0], [0], [1], [0, 0, 1, 1], [], []>} : vector<1x128xbf16>, vector<128x128xbf16>, vector<1x128xf32> -> vector<1x128xf32>
    %c4 = arith.constant 4 : index
    %c0_27 = arith.constant 0 : index
    %54 = vector.load %arg4[%c4, %c0_27] : memref<8x128xf32, #tpu.memory_space<vmem>>, vector<1x128xf32>
    %55 = arith.addf %53, %54 : vector<1x128xf32>
    %cst_28 = arith.constant 0.000000e+00 : f32
    %56 = vector.broadcast %cst_28 : f32 to vector<1x128xf32>
    %57 = arith.maximumf %55, %56 : vector<1x128xf32>
    %58 = arith.truncf %57 : vector<1x128xf32> to vector<1x128xbf16>
    %c0_29 = arith.constant 0 : index
    %c896 = arith.constant 896 : index
    %59 = vector.load %arg3[%c0_29, %c896] : memref<128x1152xbf16, #tpu.memory_space<vmem>>, vector<128x128xbf16>
    %cst_30 = arith.constant dense<0.000000e+00> : vector<1x128xf32>
    %60 = tpu.matmul %58, %59, %cst_30 {dimension_numbers = #tpu.dot_dimension_numbers<[1], [0], [0], [1], [0, 0, 1, 1], [], []>} : vector<1x128xbf16>, vector<128x128xbf16>, vector<1x128xf32> -> vector<1x128xf32>
    %c5 = arith.constant 5 : index
    %c0_31 = arith.constant 0 : index
    %61 = vector.load %arg4[%c5, %c0_31] : memref<8x128xf32, #tpu.memory_space<vmem>>, vector<1x128xf32>
    %62 = arith.addf %60, %61 : vector<1x128xf32>
    %cst_32 = arith.constant 0.000000e+00 : f32
    %63 = vector.broadcast %cst_32 : f32 to vector<1x128xf32>
    %64 = arith.maximumf %62, %63 : vector<1x128xf32>
    %65 = arith.truncf %64 : vector<1x128xf32> to vector<1x128xbf16>
    %c0_33 = arith.constant 0 : index
    %c1024 = arith.constant 1024 : index
    %66 = vector.load %arg3[%c0_33, %c1024] : memref<128x1152xbf16, #tpu.memory_space<vmem>>, vector<128x128xbf16>
    %cst_34 = arith.constant dense<0.000000e+00> : vector<1x128xf32>
    %67 = tpu.matmul %65, %66, %cst_34 {dimension_numbers = #tpu.dot_dimension_numbers<[1], [0], [0], [1], [0, 0, 1, 1], [], []>} : vector<1x128xbf16>, vector<128x128xbf16>, vector<1x128xf32> -> vector<1x128xf32>
    %c6 = arith.constant 6 : index
    %c0_35 = arith.constant 0 : index
    %68 = vector.load %arg4[%c6, %c0_35] : memref<8x128xf32, #tpu.memory_space<vmem>>, vector<1x128xf32>
    %69 = arith.addf %67, %68 : vector<1x128xf32>
    %c0_36 = arith.constant 0 : index
    %c0_37 = arith.constant 0 : index
    %c0_38 = arith.constant 0 : index
    %70 = vector.load %arg5[%c0_36, %c0_37, %c0_38] : memref<1x1x128xf32, #tpu.memory_space<vmem>>, vector<1x1x128xf32>
    %71 = vector.shape_cast %70 : vector<1x1x128xf32> to vector<1x128xf32>
    %72 = vector.shape_cast %69 : vector<1x128xf32> to vector<1x1x128xf32>
    tpu.vector_store %arg5[%c0_36, %c0_37, %c0_38], %72 {strides = array<i32>} : memref<1x1x128xf32, #tpu.memory_space<vmem>>, vector<1x1x128xf32>,
    return
  }
  func.func @transform_0(%arg0: i32) -> (i32, i32, i32) {
    %c0_i32 = arith.constant 0 : i32
    %c0_i32_0 = arith.constant 0 : i32
    %c0_i32_1 = arith.constant 0 : i32
    return %arg0, %c0_i32, %c0_i32_0 : i32, i32, i32
  }
  func.func @transform_1(%arg0: i32) -> (i32, i32, i32) {
    %c0_i32 = arith.constant 0 : i32
    %c0_i32_0 = arith.constant 0 : i32
    %c0_i32_1 = arith.constant 0 : i32
    return %arg0, %c0_i32, %c0_i32_0 : i32, i32, i32
  }
  func.func @transform_2(%arg0: i32) -> (i32, i32) {
    %c0_i32 = arith.constant 0 : i32
    %c0_i32_0 = arith.constant 0 : i32
    %c0_i32_1 = arith.constant 0 : i32
    return %c0_i32, %c0_i32_0 : i32, i32
  }
  func.func @transform_3(%arg0: i32) -> (i32, i32) {
    %c0_i32 = arith.constant 0 : i32
    %c0_i32_0 = arith.constant 0 : i32
    %c0_i32_1 = arith.constant 0 : i32
    return %c0_i32, %c0_i32_0 : i32, i32
  }
  func.func @transform_4(%arg0: i32) -> (i32, i32, i32) {
    %c0_i32 = arith.constant 0 : i32
    %c0_i32_0 = arith.constant 0 : i32
    %c0_i32_1 = arith.constant 0 : i32
    return %arg0, %c0_i32, %c0_i32_0 : i32, i32, i32
  }
}

</mosaic_0001>

<bundles_post_ra>
// kernel: lrp_relnet_forward.1
= control target key start
LH: loop header
LB: loop body
LE: loop exit
PB: predicated region body
PF: predicated region fallthrough
CT: control target
= control target key end

     0   :  { %9 = vsyncpa [#allocation3], 0  ;;  %s3254_s0 = inlined_call_operand.vmem [shape: f32[2,16,128], index: 0, kind: input, shape index: {}]   ;;  %s3255_s1 = inlined_call_operand.vmem [shape: f32[2,1,128], index: 1, kind: input, shape index: {}]   ;;  %s3256_s2 = inlined_call_operand.vmem [shape: bf16[128,1152], index: 2, kind: input, shape index: {}]   ;;  %s3257_s3 = inlined_call_operand.vmem [shape: f32[8,128], index: 3, kind: input, shape index: {}]   ;;  %s3258_s4 = inlined_call_operand.hbm [shape: f32[2,1,128], index: 4, kind: output, shape index: {}]  }
   0x1   :  { %11 = vsyncpa [#allocation3 + $0x1], 0  ;;  %s2642_s15 = smov 0   ;;  %s2644_s16 = smov 0  }
   0x2   :  { %s2646_s17 = smov 0   ;;  %s2648_s18 = smov 0  }
   0x3 LB: > { %s2663_s19 = sadd.s32 4294967295, %s2610_s18   ;;  %s2008_s20 = sadd.s32 4294967294, %s2610_s18   ;;  %s2610_s18 = sphi %s2648_s18, %s3264_s18   ;;  %s2606_s17 = sphi %s2646_s17, %s3263_s17   ;;  %s2602_s16 = sphi %s2644_s16, %s3262_s16   ;;  %s2598_s15 = sphi %s2642_s15, %s3261_s15  }
   0x4   : > { %s2667_s21 = sadd.s32 1, %s2610_s18   ;;  %s118_s22 = sadd.s32 1, %s2606_s17 }
   0x5   : > { %s115_s23 = ssub.s32 %s2610_s18, %s2667_s21  ;;  %p128_p0 = scmp.ne.s32.totalorder %s2606_s17, %s2602_s16 }
   0x6   : > { %p116_p1 = scmp.eq.s32.totalorder %s115_s23, 0  ;;  %p129_p2 = scmp.eq.s32.totalorder %s2663_s19, 1 }
   0x7   : > { %p134_p3 = scmp.ne.s32.totalorder %s2602_s16, %s2598_s15  ;;  %p135_p4 = scmp.eq.s32.totalorder %s2008_s20, 1 }
   0x8   : > { %s2678_s24 = scalar_select %p116_p1, %s2606_s17, %s118_s22  }
   0x9   : > { %p2680_p5 = por %p129_p2, %p128_p0  ;;  %p2684_p6 = por %p135_p4, %p134_p3 }
   0xa   : > { %p2011_p7 = scmp.ge.s32.totalorder %s2610_s18, 1  ;;  %p173_p8 = scmp.lt.s32.totalorder %s2610_s18, 3 }
   0xc   : > { %p174_p9 = pnand %p2011_p7, %p173_p8 }
   0xd   : > { %v2468_v0 = vld [vmem:[%s3256_s2 + $0x4] ss:$36 sps:$4 sm:$0xff] (!%p174_p9)   ;;  %v2612_v2 = vmov (!%p174_p9), 0.0   ;;  %v2613_v3 = vmov (!%p174_p9), 0   ;;  %v2471_v4 = vld [vmem:[%s3256_s2 + $0x4c] ss:$36 sps:$4 sm:$0xff] (!%p174_p9)   ;;  %v465_v47 = vlaneseq (!%p174_p9) }
   0xe   : > { %177 = sbr.rel (%p174_p9) target bundleno = 1685 (0x695), region = 36  ;;  %v2470_v1 = vld [vmem:[%s3256_s2] ss:$36 sps:$4 sm:$0xff] (!%p174_p9)   ;;  %2201 = vmatprep.subr.bf16.mxu1 (!%p174_p9), %v2612_v2  ;;  %341 = vmatprep.mubr.bf16.mxu0 (!%p174_p9), %v2613_v3  ;;  %vm2614_vm0 = vmmov (!%p174_p9), 0   ;;  %v2473_v5 = vld [vmem:[%s3256_s2 + $0x8] ss:$36 sps:$4 sm:$0xff] (!%p174_p9)  }
   0xf   : > { %309 = vmatprep.subr.bf16.mxu0 (!%p174_p9), %v2468_v0  ;;  %2217 = vmatprep.mubr.msk.bf16.mxu1 (!%p174_p9), %vm2614_vm0, %v2612_v2  ;;  %v2474_v6 = vld [vmem:[%s3256_s2 + $0x48] ss:$36 sps:$4 sm:$0xff] (!%p174_p9)   ;;  %v2475_v7 = vld [vmem:[%s3256_s2 + $0x94] ss:$36 sps:$4 sm:$0xff] (!%p174_p9)   ;;  %v2479_v10 = vld [vmem:[%s3256_s2 + $0xdc] ss:$36 sps:$4 sm:$0xff] (!%p174_p9)  }
  0x10   : > { %310 = vmatpush1.bf16.msra.mxu0 (!%p174_p9), %v2470_v1  ;;  %2202 = vmatpush3.bf16.msra.mxu1 (!%p174_p9), %v2473_v5  ;;  %v2477_v8 = vld [vmem:[%s3256_s2 + $0x50] ss:$36 sps:$4 sm:$0xff] (!%p174_p9)   ;;  %v2481_v11 = vld [vmem:[%s3256_s2 + $0x98] ss:$36 sps:$4 sm:$0xff] (!%p174_p9)   ;;  %p201_p10 = scmp.lt.s32.totalorder (!%p174_p9), %s2663_s19, 1  ;;  %v466_v49 = vshrl.u32 (!%p174_p9), %v465_v47, 7 }
  0x11   : > { %311 = vmatprep.subr.bf16.mxu0 (!%p174_p9), %v2471_v4  ;;  %2203 = vmatprep.subr.bf16.mxu1 (!%p174_p9), %v2612_v2  ;;  %v2478_v9 = vld [vmem:[%s3256_s2 + $0x90] ss:$36 sps:$4 sm:$0xff] (!%p174_p9)   ;;  %v2482_v12 = vld [vmem:[%s3256_s2 + $0xd8] ss:$36 sps:$4 sm:$0xff] (!%p174_p9)   ;;  %v2483_v13 = vld [vmem:[%s3256_s2 + $0x124] ss:$36 sps:$4 sm:$0xff] (!%p174_p9)  }
  0x12   : > { %v2485_v14 = vld [vmem:[%s3256_s2 + $0xe0] ss:$36 sps:$4 sm:$0xff] (!%p174_p9)   ;;  %v2487_v16 = vld [vmem:[%s3256_s2 + $0x16c] ss:$36 sps:$4 sm:$0xff] (!%p174_p9)   ;;  %v2491_v19 = vld [vmem:[%s3256_s2 + $0x1b4] ss:$36 sps:$4 sm:$0xff] (!%p174_p9)  }
  0x13   : > { %v2486_v15 = vld [vmem:[%s3256_s2 + $0x120] ss:$36 sps:$4 sm:$0xff] (!%p174_p9)   ;;  %v2489_v17 = vld [vmem:[%s3256_s2 + $0x128] ss:$36 sps:$4 sm:$0xff] (!%p174_p9)   ;;  %v2493_v20 = vld [vmem:[%s3256_s2 + $0x170] ss:$36 sps:$4 sm:$0xff] (!%p174_p9)  }
  0x14   : > { %312 = vmatpush1.bf16.msra.mxu0 (!%p174_p9), %v2474_v6  ;;  %2204 = vmatpush3.bf16.msra.mxu1 (!%p174_p9), %v2477_v8  ;;  %v2490_v18 = vld [vmem:[%s3256_s2 + $0x168] ss:$36 sps:$4 sm:$0xff] (!%p174_p9)   ;;  %v2494_v21 = vld [vmem:[%s3256_s2 + $0x1b0] ss:$36 sps:$4 sm:$0xff] (!%p174_p9)   ;;  %v2495_v22 = vld [vmem:[%s3256_s2 + $0x1fc] ss:$36 sps:$4 sm:$0xff] (!%p174_p9)  }
  0x15   : > { %313 = vmatprep.subr.bf16.mxu0 %v2475_v7  ;;  %2205 = vmatprep.subr.bf16.mxu1 %v2612_v2  ;;  %s2737_s10 = scalar_select %p201_p10, %s2663_s19, 1  ;;  %v2497_v23 = vld [vmem:[%s3256_s2 + $0x1b8] ss:$36 sps:$4 sm:$0xff]   ;;  %v2500_v27 = vld [vmem:[%s3256_s2 + $0xc] ss:$36 sps:$4 sm:$0xff]   ;;  %v2833_v58 = vsub.s32 0, %v466_v49 }
  0x16   : > { %v2498_v24 = vld [vmem:[%s3256_s2 + $0x1f8] ss:$36 sps:$4 sm:$0xff]   ;;  %v2499_v28 = vld [vmem:[%s3256_s2 + $0x200] ss:$36 sps:$4 sm:$0xff]   ;;  %v2504_v35 = vld [vmem:[%s3256_s2 + $0x12c] ss:$36 sps:$4 sm:$0xff]  }
  0x17   : > { %s2092_s23 = sshll.u32 %s2737_s10, 4  ;;  %s208_s29 = scalar_lea.vmem %s3255_s1, %s2737_s10  ;;  %v2501_v31 = vld [vmem:[%s3256_s2 + $0x54] ss:$36 sps:$4 sm:$0xff]   ;;  %v2502_v33 = vld [vmem:[%s3256_s2 + $0x9c] ss:$36 sps:$4 sm:$0xff]  }
  0x18   : > { %314 = vmatpush1.bf16.msra.mxu0 %v2478_v9  ;;  %2206 = vmatpush3.bf16.msra.mxu1 %v2481_v11  ;;  %s205_s14 = scalar_lea.vmem %s3254_s0, %s2092_s23  ;;  %v352_v29 = vld [vmem:[%s208_s29] sm:$0x1]  ;;  %v2503_v34 = vld [vmem:[%s3256_s2 + $0xe4] ss:$36 sps:$4 sm:$0xff]   ;;  %v2505_v36 = vld [vmem:[%s3256_s2 + $0x174] ss:$36 sps:$4 sm:$0xff]  }
  0x19   : > { %315 = vmatprep.subr.bf16.mxu0 %v2479_v10  ;;  %2207 = vmatprep.subr.bf16.mxu1 %v2612_v2  ;;  %v210_v25 = vld [vmem:[%s205_s14] sm:$0xff]  ;;  %v211_v26 = vld [vmem:[%s205_s14 + $0x8] sm:$0xff]  ;;  %v353_v32 = vpack.c.bf16 %v352_v29, %v352_v29  ;;  %v2508_v39 = vld [vmem:[%s3256_s2 + $0x10] ss:$36 sps:$4 sm:$0xff]   ;;  %v2615_v45 = vmov 1966171168  }
  0x1a   : > { %v212_v30 = vpack.c.bf16 %v211_v26, %v210_v25  ;;  %v2506_v37 = vld [vmem:[%s3256_s2 + $0x1bc] ss:$36 sps:$4 sm:$0xff]   ;;  %v2507_v38 = vld [vmem:[%s3256_s2 + $0x204] ss:$36 sps:$4 sm:$0xff]   ;;  %v2512_v43 = vld [vmem:[%s3256_s2 + $0x130] ss:$36 sps:$4 sm:$0xff]   ;;  %v463_v46 = vunpack.c.l.s4 %v2615_v45 }
  0x1b   : > { %v2509_v40 = vld [vmem:[%s3256_s2 + $0x58] ss:$36 sps:$4 sm:$0xff]   ;;  %v2510_v41 = vld [vmem:[%s3256_s2 + $0xa0] ss:$36 sps:$4 sm:$0xff]   ;;  %v2511_v42 = vld [vmem:[%s3256_s2 + $0xe8] ss:$36 sps:$4 sm:$0xff]  }
  0x1c   : > { %316 = vmatpush1.bf16.msra.mxu0 %v2482_v12  ;;  %2208 = vmatpush3.bf16.msra.mxu1 %v2485_v14  ;;  %v2513_v44 = vld [vmem:[%s3256_s2 + $0x178] ss:$36 sps:$4 sm:$0xff]   ;;  %v464_v48 = vunpack.c.0.s8 %v463_v46  ;;  %v370_v52 = vld [vmem:[%s3257_s3] sm:$0x1]  ;;  %s199_s13 = sand.u32 1, %s2602_s16   ;;  %s2089_s22 = sshll.u32 %s2663_s19, 4 }
  0x1d   : > { %317 = vmatprep.subr.bf16.mxu0 %v2483_v13  ;;  %2209 = vmatprep.subr.bf16.mxu1 %v2612_v2  ;;  %s200_s27 = scalar_lea.vmem [#allocation2], %s199_s13  ;;  %s3212_s5 = scalar_lea.hbm %s3258_s4, %s2089_s22 }
  0x1e   : > { %v467_v50 = vsub.s32 %v464_v48, %v466_v49  ;;  %s1944_s28 = sshll.u32 %s200_s27, 4  ;;  %s1932_s23 = scalar_lea.sflag [#allocation3], %s199_s13  ;;  %s3214_s28 = int_to_ptr.vmem [resolvable:$true] %s1944_s28 }
  0x1f   : > { %s2548_s19 = scalar_lea.vmem %s3214_s28, 16  ;;  %s2616_s6 = smov [#allocation2]  }
  0x20   : > { %318 = vmatpush1.bf16.msra.mxu0 %v2486_v15  ;;  %2210 = vmatpush3.bf16.msra.mxu1 %v2489_v17  ;;  %p2549_p11 = scmp.ne.s32.totalorder %s3214_s28, %s2548_s19  ;;  %s2552_s7 = sshll.u32 %s2616_s6, 4  ;;  %s2553_s7 = int_to_ptr.vmem [resolvable:$false] %s2552_s7 }
  0x21   : > { %319 = vmatprep.subr.bf16.mxu0 %v2487_v16  ;;  %2211 = vmatprep.subr.bf16.mxu1 %v2612_v2  ;;  %s2554_s8 = scalar_lea.vmem %s2553_s7, 32  ;;  %p2555_p0 = scmp.lt.s32.totalorder %s3214_s28, %s2553_s7 }
  0x22   : > { %p2550_p12 = pnand %p2549_p11, %p2680_p5  ;;  %p2556_p1 = scmp.lt.s32.totalorder %s2554_s8, %s2548_s19 }
  0x24   : > { %320 = vmatpush1.bf16.msra.mxu0 %v2490_v18  ;;  %2212 = vmatpush3.bf16.msra.mxu1 %v2493_v20  ;;  %p2551_p13 = pneg %p2550_p12  ;;  %p2557_p2 = por %p2556_p1, %p2555_p0 }
  0x25   : > { %321 = vmatprep.subr.bf16.mxu0 %v2491_v19  ;;  %2213 = vmatprep.subr.bf16.mxu1 %v2612_v2 }
  0x26   : > { %p2558_p3 = pnand %p2557_p2, %p2551_p13 }
  0x28   : > { %322 = vmatpush1.bf16.msra.mxu0 %v2494_v21  ;;  %2214 = vmatpush3.bf16.msra.mxu1 %v2497_v23 }
  0x29   : > { %323 = vmatprep.subr.bf16.mxu0 %v2495_v22  ;;  %2215 = vmatprep.subr.bf16.mxu1 %v2612_v2 }
  0x2c   : > { %324 = vmatpush1.bf16.msra.mxu0 %v2498_v24  ;;  %2216 = vmatpush3.bf16.msra.mxu1 %v2499_v28 }
  0x2d   : > { %2221 = vmatprep.subr.bf16.mxu0 %v2500_v27  ;;  %2269 = vmatprep.subr.bf16.mxu1 %v2508_v39 }
  0x2f   : > { %342 = vmatmul.mubr.bf16.vlgmr.msra.gmra.mrb[0].mxu0 %v212_v30  ;;  %2218 = vmatmul.mubr.bf16.vlgmr.msra.gmra.mrb[0].mxu1 %v353_v32 }
  0x30   : > { %2222 = vmatpush3.bf16.msra.mxu0 %v2500_v27  ;;  %2270 = vmatpush3.bf16.msra.mxu1 %v2508_v39 }
  0x31   : > { %2223 = vmatprep.subr.bf16.mxu0 %v2501_v31  ;;  %2271 = vmatprep.subr.bf16.mxu1 %v2509_v40 }
  0x34   : > { %2224 = vmatpush3.bf16.msra.mxu0 %v2501_v31  ;;  %2272 = vmatpush3.bf16.msra.mxu1 %v2509_v40 }
  0x35   : > { %2225 = vmatprep.subr.bf16.mxu0 %v2502_v33  ;;  %2273 = vmatprep.subr.bf16.mxu1 %v2510_v41 }
  0x38   : > { %2226 = vmatpush3.bf16.msra.mxu0 %v2502_v33  ;;  %2274 = vmatpush3.bf16.msra.mxu1 %v2510_v41 }
  0x39   : > { %2227 = vmatprep.subr.bf16.mxu0 %v2503_v34  ;;  %2275 = vmatprep.subr.bf16.mxu1 %v2511_v42 }
  0x3c   : > { %2228 = vmatpush3.bf16.msra.mxu0 %v2503_v34  ;;  %2276 = vmatpush3.bf16.msra.mxu1 %v2511_v42 }
  0x3d   : > { %2229 = vmatprep.subr.bf16.mxu0 %v2504_v35  ;;  %2277 = vmatprep.subr.bf16.mxu1 %v2512_v43 }
  0x40   : > { %2230 = vmatpush3.bf16.msra.mxu0 %v2504_v35  ;;  %2278 = vmatpush3.bf16.msra.mxu1 %v2512_v43 }
  0x41   : > { %2231 = vmatprep.subr.bf16.mxu0 %v2505_v36  ;;  %2279 = vmatprep.subr.bf16.mxu1 %v2513_v44 }
  0x44   : > { %2232 = vmatpush3.bf16.msra.mxu0 %v2505_v36  ;;  %2280 = vmatpush3.bf16.msra.mxu1 %v2513_v44 }
  0x45   : > { %2233 = vmatprep.subr.bf16.mxu0 %v2506_v37 }
  0x48   : > { %2234 = vmatpush3.bf16.msra.mxu0 %v2506_v37 }
  0x49   : > { %2235 = vmatprep.subr.bf16.mxu0 %v2507_v38 }
  0x4c   : > { %2236 = vmatpush3.bf16.msra.mxu0 %v2507_v38 }
 0x102   : > { %v2826_v51 = vpop.f32.mrb[0].mxu0  ;;  %v453_v57 = vpop.f32.mrb[0].mxu1 }
 0x103   : > { %v345_v53 = vpop.f32.mrb[1].mxu0  ;;  %v454_v60 = vadd.f32 %v453_v57, %v370_v52  ;;  %v2219_v61 = vpop.f32.mrb[1].mxu1 }
 0x104   : > { %v461_v54 = vcombine.high %v345_v53, %v345_v53  ;;  %v468_v55 = vrot.slane %v345_v53, %v467_v50  ;;  %v2831_v56 = vpop.f32.mrb[2].mxu0  ;;  %v456_v3 = vpop.f32.mrb[2].mxu1 }
 0x105   : > { %v349_v59 = vpop.f32.mrb[3].mxu0  ;;  %v2836_v5 = vrot.slane %v454_v60, %v2833_v58  ;;  %v2220_v6 = vpop.f32.mrb[3].mxu1 }
 0x106   : > { %v475_v62 = vrot.slane %v461_v54, %v467_v50  ;;  %v476_v63 = vcombine.high %v468_v55, %v468_v55  ;;  %v484_v0 = vrot.slane %v468_v55, %v467_v50  ;;  %v510_v1 = vcombine.high %v349_v59, %v349_v59 }
 0x107   : > { %v517_v4 = vrot.slane %v349_v59, %v467_v50 }
 0x108   : > { %v477_v7 = vcombine.high %v475_v62, %v475_v62  ;;  %v491_v8 = vrot.slane %v475_v62, %v467_v50  ;;  %v498_v9 = vrot.slane %v476_v63, %v467_v50  ;;  %v506_v10 = vcombine.high %v484_v0, %v484_v0 }
 0x109   : > { %v562_v11 = vrot.slane %v484_v0, %v2833_v58  ;;  %v524_v12 = vrot.slane %v510_v1, %v467_v50  ;;  %v525_v13 = vcombine.high %v517_v4, %v517_v4  ;;  %v533_v14 = vrot.slane %v517_v4, %v467_v50 }
 0x10a   : > { %v2839_v15 = vrot.slane %v477_v7, %v467_v50  ;;  %v507_v16 = vcombine.high %v491_v8, %v491_v8  ;;  %v508_v17 = vcombine.high %v498_v9, %v498_v9  ;;  %v566_v18 = vrot.slane %v498_v9, %v2833_v58 }
 0x10b   : > { %v570_v19 = vrot.slane %v506_v10, %v2833_v58  ;;  %v578_v20 = vrot.slane %v491_v8, %v2833_v58  ;;  %v639_v21 = vadd.f32 %v562_v11, %v2826_v51  ;;  %v526_v22 = vcombine.high %v524_v12, %v524_v12 }
 0x10c   : > { %v509_v23 = vcombine.high %v2839_v15, %v2839_v15  ;;  %v574_v24 = vrot.slane %v508_v17, %v2833_v58  ;;  %v582_v25 = vrot.slane %v2839_v15, %v2833_v58  ;;  %v586_v26 = vrot.slane %v507_v16, %v2833_v58 }
 0x10d   : > { %v641_v27 = vadd.f32 %v566_v18, %v2826_v51  ;;  %v540_v28 = vrot.slane %v524_v12, %v467_v50  ;;  %v547_v29 = vrot.slane %v525_v13, %v467_v50  ;;  %v2852_v30 = vrot.slane %v526_v22, %v467_v50 }
 0x10e   : > { %v555_v31 = vcombine.high %v533_v14, %v533_v14  ;;  %v594_v32 = vrot.slane %v533_v14, %v2833_v58  ;;  %v640_v33 = vadd.f32 %v562_v11, %v2831_v56  ;;  %v675_v34 = vadd.f32 %v2836_v5, %v639_v21 }
 0x10f   : > { %v556_v35 = vcombine.high %v540_v28, %v540_v28  ;;  %v557_v36 = vcombine.high %v547_v29, %v547_v29  ;;  %v558_v37 = vcombine.high %v2852_v30, %v2852_v30  ;;  %v2860_v38 = vrot.slane %v547_v29, %v2833_v58 }
 0x110   : > { %v2863_v39 = vrot.slane %v555_v31, %v2833_v58  ;;  %v2866_v40 = vrot.slane %v540_v28, %v2833_v58  ;;  %v2870_v41 = vrot.slane %v2852_v30, %v2833_v58  ;;  %v655_v42 = vadd.f32 %v594_v32, %v2826_v51 }
 0x111   : > { %v2874_v43 = vrot.slane %v557_v36, %v2833_v58  ;;  %v2877_v44 = vrot.slane %v556_v35, %v2833_v58  ;;  %v656_v45 = vadd.f32 %v594_v32, %v2831_v56  ;;  %v676_v46 = vadd.f32 %v2836_v5, %v640_v33 }
 0x112   : > { %v707_v47 = vmax.f32 %v675_v34, 0.0  ;;  %v642_v48 = vadd.f32 %v566_v18, %v2831_v56  ;;  %v677_v49 = vadd.f32 %v2836_v5, %v641_v27  ;;  %v643_v50 = vadd.f32 %v570_v19, %v2826_v51 }
 0x113   : > { %v708_v52 = vmax.f32 %v676_v46, 0.0  ;;  %v644_v53 = vadd.f32 %v570_v19, %v2831_v56  ;;  %v645_v54 = vadd.f32 %v574_v24, %v2826_v51  ;;  %v646_v55 = vadd.f32 %v574_v24, %v2831_v56 }
 0x114   : > { %v678_v57 = vadd.f32 %v2836_v5, %v642_v48  ;;  %v709_v59 = vmax.f32 %v677_v49, 0.0  ;;  %v679_v60 = vadd.f32 %v2836_v5, %v643_v50  ;;  %v647_v61 = vadd.f32 %v578_v20, %v2826_v51 }
 0x115   : > { %v739_v62 = vpack.c.bf16 %v708_v52, %v707_v47  ;;  %v680_v63 = vadd.f32 %v2836_v5, %v644_v53  ;;  %v681_v0 = vadd.f32 %v2836_v5, %v645_v54  ;;  %v682_v1 = vadd.f32 %v2836_v5, %v646_v55 }
 0x116   : > { %v710_v3 = vmax.f32 %v678_v57, 0.0  ;;  %v711_v4 = vmax.f32 %v679_v60, 0.0  ;;  %v648_v6 = vadd.f32 %v578_v20, %v2831_v56  ;;  %v683_v7 = vadd.f32 %v2836_v5, %v647_v61 }
 0x117   : > { %2237 = vmatprep.mubr.bf16.mxu0 %v739_v62  ;;  %v712_v8 = vmax.f32 %v680_v63, 0.0  ;;  %v713_v9 = vmax.f32 %v681_v0, 0.0  ;;  %v714_v10 = vmax.f32 %v682_v1, 0.0  ;;  %v649_v11 = vadd.f32 %v582_v25, %v2826_v51 }
 0x118   : > { %v740_v12 = vpack.c.bf16 %v710_v3, %v709_v59  ;;  %v684_v13 = vadd.f32 %v2836_v5, %v648_v6  ;;  %v715_v14 = vmax.f32 %v683_v7, 0.0  ;;  %v650_v15 = vadd.f32 %v582_v25, %v2831_v56 }
 0x119   : > { %v741_v16 = vpack.c.bf16 %v712_v8, %v711_v4  ;;  %v742_v17 = vpack.c.bf16 %v714_v10, %v713_v9  ;;  %v685_v18 = vadd.f32 %v2836_v5, %v649_v11  ;;  %v651_v19 = vadd.f32 %v586_v26, %v2826_v51 }
 0x11a   : > { %2238 = vmatmul.mubr.bf16.vlgmr.msra.gmra.mrb[4].mxu0 %v740_v12  ;;  %v716_v20 = vmax.f32 %v684_v13, 0.0  ;;  %v686_v21 = vadd.f32 %v2836_v5, %v650_v15  ;;  %v652_v22 = vadd.f32 %v586_v26, %v2831_v56  ;;  %v590_v24 = vrot.slane %v509_v23, %v2833_v58 }
 0x11b   : > { %2241 = vmatprep.mubr.bf16.mxu0 %v741_v16  ;;  %v717_v27 = vmax.f32 %v685_v18, 0.0  ;;  %v687_v28 = vadd.f32 %v2836_v5, %v651_v19  ;;  %v691_v25 = vadd.f32 %v2836_v5, %v655_v42  ;;  %v692_v29 = vadd.f32 %v2836_v5, %v656_v45 }
 0x11c   : > { %v743_v31 = vpack.c.bf16 %v716_v20, %v715_v14  ;;  %v718_v32 = vmax.f32 %v686_v21, 0.0  ;;  %v688_v33 = vadd.f32 %v2836_v5, %v652_v22  ;;  %v653_v34 = vadd.f32 %v590_v24, %v2826_v51 }
 0x11d   : > { %v719_v35 = vmax.f32 %v687_v28, 0.0  ;;  %v654_v36 = vadd.f32 %v590_v24, %v2831_v56  ;;  %v723_v26 = vmax.f32 %v691_v25, 0.0  ;;  %v724_v46 = vmax.f32 %v692_v29, 0.0 }
 0x11e   : > { %v744_v23 = vpack.c.bf16 %v718_v32, %v717_v27  ;;  %v720_v47 = vmax.f32 %v688_v33, 0.0  ;;  %v689_v48 = vadd.f32 %v2836_v5, %v653_v34  ;;  %v657_v42 = vadd.f32 %v2860_v38, %v2826_v51 }
 0x11f   : > { %v690_v45 = vadd.f32 %v2836_v5, %v654_v36  ;;  %v747_v49 = vpack.c.bf16 %v724_v46, %v723_v26  ;;  %v658_v50 = vadd.f32 %v2860_v38, %v2831_v56  ;;  %v659_v52 = vadd.f32 %v2863_v39, %v2826_v51  ;;  %v2517_v46 = vld [vmem:[%s3256_s2 + $0x5c] ss:$36 sps:$4 sm:$0xff]  }
 0x120   : > { %v745_v53 = vpack.c.bf16 %v720_v47, %v719_v35  ;;  %v721_v54 = vmax.f32 %v689_v48, 0.0  ;;  %v693_v55 = vadd.f32 %v2836_v5, %v657_v42  ;;  %v660_v57 = vadd.f32 %v2863_v39, %v2831_v56  ;;  %v2519_v47 = vld [vmem:[%s3256_s2 + $0xec] ss:$36 sps:$4 sm:$0xff]   ;;  %v2520_v48 = vld [vmem:[%s3256_s2 + $0x134] ss:$36 sps:$4 sm:$0xff]  }
 0x121   : > { %v722_v59 = vmax.f32 %v690_v45, 0.0  ;;  %v694_v60 = vadd.f32 %v2836_v5, %v658_v50  ;;  %v695_v61 = vadd.f32 %v2836_v5, %v659_v52  ;;  %v661_v62 = vadd.f32 %v2874_v43, %v2826_v51  ;;  %v2521_v42 = vld [vmem:[%s3256_s2 + $0x17c] ss:$36 sps:$4 sm:$0xff]   ;;  %v2522_v45 = vld [vmem:[%s3256_s2 + $0x1c4] ss:$36 sps:$4 sm:$0xff]  }
 0x122   : > { %2242 = vmatmul.mubr.bf16.gmra.mrb[8].mxu0 %v742_v17  ;;  %v725_v38 = vmax.f32 %v693_v55, 0.0  ;;  %v696_v63 = vadd.f32 %v2836_v5, %v660_v57  ;;  %v662_v0 = vadd.f32 %v2874_v43, %v2831_v56  ;;  %v663_v1 = vadd.f32 %v2866_v40, %v2826_v51 }
 0x123   : > { %2245 = vmatprep.mubr.bf16.mxu0 %v743_v31  ;;  %v746_v39 = vpack.c.bf16 %v722_v59, %v721_v54  ;;  %v726_v3 = vmax.f32 %v694_v60, 0.0  ;;  %v727_v4 = vmax.f32 %v695_v61, 0.0  ;;  %v697_v6 = vadd.f32 %v2836_v5, %v661_v62 }
 0x124   : > { %v728_v7 = vmax.f32 %v696_v63, 0.0  ;;  %v698_v8 = vadd.f32 %v2836_v5, %v662_v0  ;;  %v664_v9 = vadd.f32 %v2866_v40, %v2831_v56  ;;  %v699_v10 = vadd.f32 %v2836_v5, %v663_v1 }
 0x125   : > { %v748_v11 = vpack.c.bf16 %v726_v3, %v725_v38  ;;  %v729_v12 = vmax.f32 %v697_v6, 0.0  ;;  %v665_v43 = vadd.f32 %v2870_v41, %v2826_v51  ;;  %v666_v13 = vadd.f32 %v2870_v41, %v2831_v56 }
 0x126   : > { %v749_v14 = vpack.c.bf16 %v728_v7, %v727_v4  ;;  %v730_v15 = vmax.f32 %v698_v8, 0.0  ;;  %v700_v16 = vadd.f32 %v2836_v5, %v664_v9  ;;  %v731_v17 = vmax.f32 %v699_v10, 0.0 }
 0x127   : > { %v701_v18 = vadd.f32 %v2836_v5, %v665_v43  ;;  %v702_v19 = vadd.f32 %v2836_v5, %v666_v13  ;;  %v667_v40 = vadd.f32 %v2877_v44, %v2826_v51  ;;  %v668_v20 = vadd.f32 %v2877_v44, %v2831_v56 }
 0x128   : > { %v750_v21 = vpack.c.bf16 %v730_v15, %v729_v12  ;;  %v732_v22 = vmax.f32 %v700_v16, 0.0  ;;  %v622_v41 = vrot.slane %v558_v37, %v2833_v58 }
 0x129   : > { %v733_v24 = vmax.f32 %v701_v18, 0.0  ;;  %v734_v27 = vmax.f32 %v702_v19, 0.0  ;;  %v703_v28 = vadd.f32 %v2836_v5, %v667_v40  ;;  %v704_v25 = vadd.f32 %v2836_v5, %v668_v20 }
 0x12a   : > { %2246 = vmatmul.mubr.bf16.gmra.mrb[12].mxu0 %v744_v23  ;;  %v751_v29 = vpack.c.bf16 %v732_v22, %v731_v17  ;;  %v669_v31 = vadd.f32 %v622_v41, %v2826_v51  ;;  %v670_v32 = vadd.f32 %v622_v41, %v2831_v56  ;;  %v2514_v51 = vld [vmem:[%s3256_s2 + $0x1c0] ss:$36 sps:$4 sm:$0xff]   ;;  %v2515_v56 = vld [vmem:[%s3256_s2 + $0x208] ss:$36 sps:$4 sm:$0xff]  }
 0x12b   : > { %2249 = vmatprep.mubr.bf16.mxu0 %v745_v53  ;;  %v752_v44 = vpack.c.bf16 %v734_v27, %v733_v24  ;;  %v735_v33 = vmax.f32 %v703_v28, 0.0  ;;  %v736_v34 = vmax.f32 %v704_v25, 0.0  ;;  %2281 = vmatprep.subr.bf16.mxu1 %v2514_v51  ;;  %v2518_v23 = vld [vmem:[%s3256_s2 + $0xa4] ss:$36 sps:$4 sm:$0xff]  }
 0x12c   : > { %v705_v35 = vadd.f32 %v2836_v5, %v669_v31  ;;  %v706_v58 = vadd.f32 %v2836_v5, %v670_v32  ;;  %2282 = vmatpush3.bf16.msra.mxu1 %v2514_v51  ;;  %v2516_v5 = vld [vmem:[%s3256_s2 + $0x14] ss:$36 sps:$4 sm:$0xff]  }
 0x12d   : > { %v753_v30 = vpack.c.bf16 %v736_v34, %v735_v33  ;;  %2283 = vmatprep.subr.bf16.mxu1 %v2515_v56  ;;  %2317 = vmatprep.subr.bf16.mxu0 %v2516_v5 }
 0x12e   : > { %v737_v37 = vmax.f32 %v705_v35, 0.0  ;;  %v738_v36 = vmax.f32 %v706_v58, 0.0  ;;  %2318 = vmatpush3.bf16.msra.mxu0 %v2516_v5 }
 0x12f   : > { %2319 = vmatprep.subr.bf16.mxu0 %v2517_v46 }
 0x130   : > { %v754_v26 = vpack.c.bf16 %v738_v36, %v737_v37  ;;  %2284 = vmatpush3.bf16.msra.mxu1 %v2515_v56 }
 0x131   : > { %2365 = vmatprep.subr.bf16.mxu1 %v2612_v2 }
 0x132   : > { %2250 = vmatmul.mubr.bf16.gmra.mrb[16].mxu0 %v746_v39 }
 0x133   : > { %2253 = vmatprep.mubr.bf16.mxu0 %v747_v49  ;;  %2320 = vmatpush3.bf16.msra.mxu0 %v2517_v46  ;;  %v2986_v49 = vld [vmem:[%s3257_s3 + $0x1] ss:$0 sm:$0xff] }
 0x134   : > { %2321 = vmatprep.subr.bf16.mxu0 %v2518_v23 }
 0x137   : > { %2322 = vmatpush3.bf16.msra.mxu0 %v2518_v23 }
 0x138   : > { %2323 = vmatprep.subr.bf16.mxu0 %v2519_v47 }
 0x13a   : > { %2254 = vmatmul.mubr.bf16.gmra.mrb[20].mxu0 %v748_v11 }
 0x13b   : > { %2257 = vmatprep.mubr.bf16.mxu0 %v749_v14  ;;  %2324 = vmatpush3.bf16.msra.mxu0 %v2519_v47 }
 0x13c   : > { %2325 = vmatprep.subr.bf16.mxu0 %v2520_v48 }
 0x13f   : > { %2326 = vmatpush3.bf16.msra.mxu0 %v2520_v48 }
 0x140   : > { %2327 = vmatprep.subr.bf16.mxu0 %v2521_v42 }
 0x142   : > { %2258 = vmatmul.mubr.bf16.gmra.mrb[24].mxu0 %v750_v21 }
 0x143   : > { %2261 = vmatprep.mubr.bf16.mxu0 %v751_v29  ;;  %2328 = vmatpush3.bf16.msra.mxu0 %v2521_v42 }
 0x144   : > { %2329 = vmatprep.subr.bf16.mxu0 %v2522_v45 }
 0x147   : > { %2330 = vmatpush3.bf16.msra.mxu0 %v2522_v45 }
 0x14a   : > { %2262 = vmatmul.mubr.bf16.gmra.mrb[28].mxu0 %v752_v44 }
 0x14b   : > { %2265 = vmatprep.mubr.bf16.mxu0 %v753_v30 }
 0x152   : > { %2266 = vmatmul.mubr.bf16.gmra.mrb[32].mxu0 %v754_v26 }
 0x1ed   : > { %v2239_v50 = vpop.f32.mrb[4].mxu0 }
 0x1ee   : > { %v867_v52 = vadd.f32 %v2239_v50, %v2986_v49  ;;  %v858_v53 = vpop.f32.mrb[5].mxu0 }
 0x1ef   : > { %v859_v54 = vadd.f32 %v2986_v49, %v858_v53  ;;  %v2240_v55 = vpop.f32.mrb[6].mxu0 }
 0x1f0   : > { %v870_v57 = vadd.f32 %v2240_v55, %v2986_v49  ;;  %v861_v59 = vpop.f32.mrb[7].mxu0  ;;  %v987_v61 = vmax.f32 %v867_v52, 0.0 }
 0x1f1   : > { %v862_v60 = vadd.f32 %v2986_v49, %v861_v59  ;;  %v985_v38 = vmax.f32 %v859_v54, 0.0 }
 0x1f2   : > { %v988_v62 = vmax.f32 %v870_v57, 0.0 }
 0x1f3   : > { %v986_v63 = vmax.f32 %v862_v60, 0.0 }
 0x1f4   : > { %v1018_v0 = vpack.c.bf16 %v988_v62, %v987_v61 }
 0x1f5   : > { %v1017_v1 = vpack.c.bf16 %v986_v63, %v985_v38  ;;  %v2243_v39 = vpop.f32.mrb[8].mxu0 }
 0x1f6   : > { %v883_v3 = vadd.f32 %v2243_v39, %v2986_v49  ;;  %v874_v4 = vpop.f32.mrb[9].mxu0 }
 0x1f7   : > { %v875_v6 = vadd.f32 %v2986_v49, %v874_v4  ;;  %v2244_v7 = vpop.f32.mrb[10].mxu0  ;;  %2285 = vmatprep.mubr.bf16.mxu1 %v1017_v1 }
 0x1f8   : > { %v886_v8 = vadd.f32 %v2244_v7, %v2986_v49  ;;  %v877_v9 = vpop.f32.mrb[11].mxu0  ;;  %2286 = vmatmul.mubr.bf16.vlgmr.msra.gmra.mrb[4].mxu1 %v1018_v0  ;;  %v991_v11 = vmax.f32 %v883_v3, 0.0 }
 0x1f9   : > { %v878_v10 = vadd.f32 %v2986_v49, %v877_v9  ;;  %v989_v43 = vmax.f32 %v875_v6, 0.0 }
 0x1fa   : > { %v992_v12 = vmax.f32 %v886_v8, 0.0 }
 0x1fb   : > { %v990_v13 = vmax.f32 %v878_v10, 0.0 }
 0x1fc   : > { %v1020_v14 = vpack.c.bf16 %v992_v12, %v991_v11 }
 0x1fd   : > { %v1019_v15 = vpack.c.bf16 %v990_v13, %v989_v43  ;;  %v2247_v16 = vpop.f32.mrb[12].mxu0 }
 0x1fe   : > { %v899_v17 = vadd.f32 %v2247_v16, %v2986_v49  ;;  %v890_v18 = vpop.f32.mrb[13].mxu0 }
 0x1ff   : > { %v891_v19 = vadd.f32 %v2986_v49, %v890_v18  ;;  %v2248_v40 = vpop.f32.mrb[14].mxu0  ;;  %2289 = vmatprep.mubr.bf16.mxu1 %v1019_v15 }
 0x200   : > { %v902_v20 = vadd.f32 %v2248_v40, %v2986_v49  ;;  %v893_v21 = vpop.f32.mrb[15].mxu0  ;;  %2290 = vmatmul.mubr.bf16.gmra.mrb[8].mxu1 %v1020_v14  ;;  %v995_v41 = vmax.f32 %v899_v17, 0.0 }
 0x201   : > { %v894_v22 = vadd.f32 %v2986_v49, %v893_v21  ;;  %v993_v27 = vmax.f32 %v891_v19, 0.0 }
 0x202   : > { %v996_v24 = vmax.f32 %v902_v20, 0.0 }
 0x203   : > { %v994_v28 = vmax.f32 %v894_v22, 0.0 }
 0x204   : > { %v1022_v25 = vpack.c.bf16 %v996_v24, %v995_v41 }
 0x205   : > { %v1021_v29 = vpack.c.bf16 %v994_v28, %v993_v27  ;;  %v2251_v31 = vpop.f32.mrb[16].mxu0 }
 0x206   : > { %v915_v32 = vadd.f32 %v2251_v31, %v2986_v49  ;;  %v906_v44 = vpop.f32.mrb[17].mxu0 }
 0x207   : > { %v907_v33 = vadd.f32 %v2986_v49, %v906_v44  ;;  %v2252_v34 = vpop.f32.mrb[18].mxu0  ;;  %2293 = vmatprep.mubr.bf16.mxu1 %v1021_v29 }
 0x208   : > { %v918_v35 = vadd.f32 %v2252_v34, %v2986_v49  ;;  %v909_v58 = vpop.f32.mrb[19].mxu0  ;;  %2294 = vmatmul.mubr.bf16.gmra.mrb[12].mxu1 %v1022_v25  ;;  %v999_v37 = vmax.f32 %v915_v32, 0.0 }
 0x209   : > { %v910_v30 = vadd.f32 %v2986_v49, %v909_v58  ;;  %v997_v26 = vmax.f32 %v907_v33, 0.0 }
 0x20a   : > { %v1000_v36 = vmax.f32 %v918_v35, 0.0 }
 0x20b   : > { %v998_v51 = vmax.f32 %v910_v30, 0.0 }
 0x20c   : > { %v1024_v56 = vpack.c.bf16 %v1000_v36, %v999_v37  ;;  %v2523_v37 = vld [vmem:[%s3256_s2 + $0x20c] ss:$36 sps:$4 sm:$0xff]  }
 0x20d   : > { %v1023_v5 = vpack.c.bf16 %v998_v51, %v997_v26  ;;  %v2255_v46 = vpop.f32.mrb[20].mxu0  ;;  %2331 = vmatprep.subr.bf16.mxu0 %v2523_v37 }
 0x20e   : > { %v931_v23 = vadd.f32 %v2255_v46, %v2986_v49  ;;  %v922_v47 = vpop.f32.mrb[21].mxu0  ;;  %2332 = vmatpush3.bf16.msra.mxu0 %v2523_v37 }
 0x20f   : > { %v923_v48 = vadd.f32 %v2986_v49, %v922_v47  ;;  %v2256_v42 = vpop.f32.mrb[22].mxu0  ;;  %2297 = vmatprep.mubr.bf16.mxu1 %v1023_v5  ;;  %2405 = vmatprep.subr.bf16.mxu0 %v2612_v2 }
 0x210   : > { %v934_v45 = vadd.f32 %v2256_v42, %v2986_v49  ;;  %v925_v50 = vpop.f32.mrb[23].mxu0  ;;  %2298 = vmatmul.mubr.bf16.gmra.mrb[16].mxu1 %v1024_v56  ;;  %v1003_v53 = vmax.f32 %v931_v23, 0.0 }
 0x211   : > { %v926_v52 = vadd.f32 %v2986_v49, %v925_v50  ;;  %v1001_v55 = vmax.f32 %v923_v48, 0.0 }
 0x212   : > { %v1004_v54 = vmax.f32 %v934_v45, 0.0 }
 0x213   : > { %v1002_v57 = vmax.f32 %v926_v52, 0.0 }
 0x214   : > { %v1026_v59 = vpack.c.bf16 %v1004_v54, %v1003_v53 }
 0x215   : > { %v1025_v60 = vpack.c.bf16 %v1002_v57, %v1001_v55  ;;  %v2259_v61 = vpop.f32.mrb[24].mxu0 }
 0x216   : > { %v947_v62 = vadd.f32 %v2259_v61, %v2986_v49  ;;  %v938_v38 = vpop.f32.mrb[25].mxu0 }
 0x217   : > { %v939_v63 = vadd.f32 %v2986_v49, %v938_v38  ;;  %v2260_v0 = vpop.f32.mrb[26].mxu0  ;;  %2301 = vmatprep.mubr.bf16.mxu1 %v1025_v60 }
 0x218   : > { %v950_v1 = vadd.f32 %v2260_v0, %v2986_v49  ;;  %v941_v39 = vpop.f32.mrb[27].mxu0  ;;  %2302 = vmatmul.mubr.bf16.gmra.mrb[20].mxu1 %v1026_v59  ;;  %v1007_v4 = vmax.f32 %v947_v62, 0.0 }
 0x219   : > { %v942_v3 = vadd.f32 %v2986_v49, %v941_v39  ;;  %v1005_v7 = vmax.f32 %v939_v63, 0.0 }
 0x21a   : > { %v1008_v6 = vmax.f32 %v950_v1, 0.0 }
 0x21b   : > { %v1006_v8 = vmax.f32 %v942_v3, 0.0 }
 0x21c   : > { %v1028_v9 = vpack.c.bf16 %v1008_v6, %v1007_v4 }
 0x21d   : > { %v1027_v10 = vpack.c.bf16 %v1006_v8, %v1005_v7  ;;  %v2263_v11 = vpop.f32.mrb[28].mxu0 }
 0x21e   : > { %v963_v12 = vadd.f32 %v2263_v11, %v2986_v49  ;;  %v954_v43 = vpop.f32.mrb[29].mxu0 }
 0x21f   : > { %v955_v13 = vadd.f32 %v2986_v49, %v954_v43  ;;  %v2264_v14 = vpop.f32.mrb[30].mxu0  ;;  %2305 = vmatprep.mubr.bf16.mxu1 %v1027_v10 }
 0x220   : > { %v966_v15 = vadd.f32 %v2264_v14, %v2986_v49  ;;  %v957_v16 = vpop.f32.mrb[31].mxu0  ;;  %2306 = vmatmul.mubr.bf16.gmra.mrb[24].mxu1 %v1028_v9  ;;  %v1011_v18 = vmax.f32 %v963_v12, 0.0 }
 0x221   : > { %v958_v17 = vadd.f32 %v2986_v49, %v957_v16  ;;  %v1009_v40 = vmax.f32 %v955_v13, 0.0 }
 0x222   : > { %v1012_v19 = vmax.f32 %v966_v15, 0.0 }
 0x223   : > { %v1010_v20 = vmax.f32 %v958_v17, 0.0 }
 0x224   : > { %v1030_v21 = vpack.c.bf16 %v1012_v19, %v1011_v18 }
 0x225   : > { %v1029_v22 = vpack.c.bf16 %v1010_v20, %v1009_v40  ;;  %v2267_v41 = vpop.f32.mrb[32].mxu0 }
 0x226   : > { %v979_v24 = vadd.f32 %v2267_v41, %v2986_v49  ;;  %v970_v27 = vpop.f32.mrb[33].mxu0 }
 0x227   : > { %v971_v28 = vadd.f32 %v2986_v49, %v970_v27  ;;  %v2268_v25 = vpop.f32.mrb[34].mxu0  ;;  %2309 = vmatprep.mubr.bf16.mxu1 %v1029_v22 }
 0x228   : > { %v982_v29 = vadd.f32 %v2268_v25, %v2986_v49  ;;  %v973_v31 = vpop.f32.mrb[35].mxu0  ;;  %2310 = vmatmul.mubr.bf16.gmra.mrb[28].mxu1 %v1030_v21  ;;  %v1015_v44 = vmax.f32 %v979_v24, 0.0 }
 0x229   : > { %v974_v32 = vadd.f32 %v2986_v49, %v973_v31  ;;  %v1013_v34 = vmax.f32 %v971_v28, 0.0  ;;  %v3029_v49 = vld [vmem:[%s3257_s3 + $0x2] ss:$0 sm:$0xff] }
 0x22a   : > { %v1016_v33 = vmax.f32 %v982_v29, 0.0 }
 0x22b   : > { %v1014_v35 = vmax.f32 %v974_v32, 0.0 }
 0x22c   : > { %v1032_v58 = vpack.c.bf16 %v1016_v33, %v1015_v44 }
 0x22d   : > { %v1031_v30 = vpack.c.bf16 %v1014_v35, %v1013_v34 }
 0x22f   : > { %2313 = vmatprep.mubr.bf16.mxu1 %v1031_v30 }
 0x230   : > { %2314 = vmatmul.mubr.bf16.gmra.mrb[32].mxu1 %v1032_v58 }
 0x231   : > { %2381 = vmatprep.mubr.msk.bf16.mxu1 %vm2614_vm0, %v2612_v2 }
 0x2cb   : > { %v2287_v36 = vpop.f32.mrb[4].mxu1 }
 0x2cc   : > { %v1145_v26 = vadd.f32 %v2287_v36, %v3029_v49  ;;  %v1136_v51 = vpop.f32.mrb[5].mxu1 }
 0x2cd   : > { %v1137_v56 = vadd.f32 %v3029_v49, %v1136_v51  ;;  %v2288_v5 = vpop.f32.mrb[6].mxu1 }
 0x2ce   : > { %v1148_v46 = vadd.f32 %v2288_v5, %v3029_v49  ;;  %v1139_v23 = vpop.f32.mrb[7].mxu1  ;;  %v1265_v48 = vmax.f32 %v1145_v26, 0.0 }
 0x2cf   : > { %v1140_v47 = vadd.f32 %v3029_v49, %v1139_v23  ;;  %v1263_v45 = vmax.f32 %v1137_v56, 0.0 }
 0x2d0   : > { %v1266_v42 = vmax.f32 %v1148_v46, 0.0 }
 0x2d1   : > { %v1264_v50 = vmax.f32 %v1140_v47, 0.0 }
 0x2d2   : > { %v1296_v52 = vpack.c.bf16 %v1266_v42, %v1265_v48 }
 0x2d3   : > { %v1295_v53 = vpack.c.bf16 %v1264_v50, %v1263_v45  ;;  %v2291_v54 = vpop.f32.mrb[8].mxu1 }
 0x2d4   : > { %v1161_v55 = vadd.f32 %v2291_v54, %v3029_v49  ;;  %v1152_v57 = vpop.f32.mrb[9].mxu1 }
 0x2d5   : > { %v1153_v59 = vadd.f32 %v3029_v49, %v1152_v57  ;;  %v2292_v60 = vpop.f32.mrb[10].mxu1  ;;  %2333 = vmatprep.mubr.bf16.mxu0 %v1295_v53 }
 0x2d6   : > { %v1164_v61 = vadd.f32 %v2292_v60, %v3029_v49  ;;  %v1155_v62 = vpop.f32.mrb[11].mxu1  ;;  %2334 = vmatmul.mubr.bf16.vlgmr.msra.gmra.mrb[36].mxu0 %v1296_v52  ;;  %v1269_v63 = vmax.f32 %v1161_v55, 0.0 }
 0x2d7   : > { %v1156_v38 = vadd.f32 %v3029_v49, %v1155_v62  ;;  %v1267_v1 = vmax.f32 %v1153_v59, 0.0 }
 0x2d8   : > { %v1270_v0 = vmax.f32 %v1164_v61, 0.0 }
 0x2d9   : > { %v1268_v39 = vmax.f32 %v1156_v38, 0.0 }
 0x2da   : > { %v1298_v3 = vpack.c.bf16 %v1270_v0, %v1269_v63 }
 0x2db   : > { %v1297_v4 = vpack.c.bf16 %v1268_v39, %v1267_v1  ;;  %v2295_v6 = vpop.f32.mrb[12].mxu1 }
 0x2dc   : > { %v1177_v7 = vadd.f32 %v2295_v6, %v3029_v49  ;;  %v1168_v8 = vpop.f32.mrb[13].mxu1 }
 0x2dd   : > { %v1169_v9 = vadd.f32 %v3029_v49, %v1168_v8  ;;  %v2296_v10 = vpop.f32.mrb[14].mxu1  ;;  %2337 = vmatprep.mubr.bf16.mxu0 %v1297_v4 }
 0x2de   : > { %v1180_v11 = vadd.f32 %v2296_v10, %v3029_v49  ;;  %v1171_v12 = vpop.f32.mrb[15].mxu1  ;;  %2338 = vmatmul.mubr.bf16.gmra.mrb[40].mxu0 %v1298_v3  ;;  %v1273_v13 = vmax.f32 %v1177_v7, 0.0 }
 0x2df   : > { %v1172_v43 = vadd.f32 %v3029_v49, %v1171_v12  ;;  %v1271_v15 = vmax.f32 %v1169_v9, 0.0 }
 0x2e0   : > { %v1274_v14 = vmax.f32 %v1180_v11, 0.0 }
 0x2e1   : > { %v1272_v16 = vmax.f32 %v1172_v43, 0.0 }
 0x2e2   : > { %v1300_v17 = vpack.c.bf16 %v1274_v14, %v1273_v13 }
 0x2e3   : > { %v1299_v18 = vpack.c.bf16 %v1272_v16, %v1271_v15  ;;  %v2299_v19 = vpop.f32.mrb[16].mxu1 }
 0x2e4   : > { %v1193_v40 = vadd.f32 %v2299_v19, %v3029_v49  ;;  %v1184_v20 = vpop.f32.mrb[17].mxu1 }
 0x2e5   : > { %v1185_v21 = vadd.f32 %v3029_v49, %v1184_v20  ;;  %v2300_v22 = vpop.f32.mrb[18].mxu1  ;;  %2341 = vmatprep.mubr.bf16.mxu0 %v1299_v18 }
 0x2e6   : > { %v1196_v41 = vadd.f32 %v2300_v22, %v3029_v49  ;;  %v1187_v24 = vpop.f32.mrb[19].mxu1  ;;  %2342 = vmatmul.mubr.bf16.gmra.mrb[44].mxu0 %v1300_v17  ;;  %v1277_v28 = vmax.f32 %v1193_v40, 0.0 }
 0x2e7   : > { %v1188_v27 = vadd.f32 %v3029_v49, %v1187_v24  ;;  %v1275_v29 = vmax.f32 %v1185_v21, 0.0 }
 0x2e8   : > { %v1278_v25 = vmax.f32 %v1196_v41, 0.0 }
 0x2e9   : > { %v1276_v31 = vmax.f32 %v1188_v27, 0.0 }
 0x2ea   : > { %v1302_v32 = vpack.c.bf16 %v1278_v25, %v1277_v28  ;;  %v2524_v28 = vld [vmem:[%s3256_s2 + $0x18] ss:$36 sps:$4 sm:$0xff]   ;;  %v2526_v25 = vld [vmem:[%s3256_s2 + $0xa8] ss:$36 sps:$4 sm:$0xff]  }
 0x2eb   : > { %v1301_v44 = vpack.c.bf16 %v1276_v31, %v1275_v29  ;;  %v2303_v33 = vpop.f32.mrb[20].mxu1  ;;  %2366 = vmatpush3.bf16.msra.mxu1 %v2524_v28  ;;  %v2527_v29 = vld [vmem:[%s3256_s2 + $0xf0] ss:$36 sps:$4 sm:$0xff]   ;;  %v2528_v31 = vld [vmem:[%s3256_s2 + $0x138] ss:$36 sps:$4 sm:$0xff]  }
 0x2ec   : > { %v1209_v34 = vadd.f32 %v2303_v33, %v3029_v49  ;;  %v1200_v35 = vpop.f32.mrb[21].mxu1  ;;  %2367 = vmatprep.subr.bf16.mxu1 %v2612_v2  ;;  %v2531_v33 = vld [vmem:[%s3256_s2 + $0x210] ss:$36 sps:$4 sm:$0xff]  }
 0x2ed   : > { %v1201_v58 = vadd.f32 %v3029_v49, %v1200_v35  ;;  %v2304_v30 = vpop.f32.mrb[22].mxu1  ;;  %2345 = vmatprep.mubr.bf16.mxu0 %v1301_v44  ;;  %v2530_v44 = vld [vmem:[%s3256_s2 + $0x1c8] ss:$36 sps:$4 sm:$0xff]  }
 0x2ee   : > { %v1212_v37 = vadd.f32 %v2304_v30, %v3029_v49  ;;  %v1203_v36 = vpop.f32.mrb[23].mxu1  ;;  %2346 = vmatmul.mubr.bf16.gmra.mrb[48].mxu0 %v1302_v32  ;;  %v1281_v51 = vmax.f32 %v1209_v34, 0.0  ;;  %v2529_v32 = vld [vmem:[%s3256_s2 + $0x180] ss:$36 sps:$4 sm:$0xff]  }
 0x2ef   : > { %v1204_v26 = vadd.f32 %v3029_v49, %v1203_v36  ;;  %v1279_v5 = vmax.f32 %v1201_v58, 0.0  ;;  %v3100_v34 = vld [vmem:[%s3257_s3 + $0x3] ss:$0 sm:$0xff] }
 0x2f0   : > { %v1282_v56 = vmax.f32 %v1212_v37, 0.0 }
 0x2f1   : > { %v1280_v46 = vmax.f32 %v1204_v26, 0.0 }
 0x2f2   : > { %v1304_v23 = vpack.c.bf16 %v1282_v56, %v1281_v51 }
 0x2f3   : > { %v1303_v47 = vpack.c.bf16 %v1280_v46, %v1279_v5  ;;  %v2307_v48 = vpop.f32.mrb[24].mxu1 }
 0x2f4   : > { %v1225_v42 = vadd.f32 %v2307_v48, %v3029_v49  ;;  %v1216_v45 = vpop.f32.mrb[25].mxu1 }
 0x2f5   : > { %v1217_v50 = vadd.f32 %v3029_v49, %v1216_v45  ;;  %v2308_v52 = vpop.f32.mrb[26].mxu1  ;;  %2349 = vmatprep.mubr.bf16.mxu0 %v1303_v47 }
 0x2f6   : > { %v1228_v53 = vadd.f32 %v2308_v52, %v3029_v49  ;;  %v1219_v54 = vpop.f32.mrb[27].mxu1  ;;  %2350 = vmatmul.mubr.bf16.gmra.mrb[52].mxu0 %v1304_v23  ;;  %v1285_v57 = vmax.f32 %v1225_v42, 0.0 }
 0x2f7   : > { %v1220_v55 = vadd.f32 %v3029_v49, %v1219_v54  ;;  %v1283_v60 = vmax.f32 %v1217_v50, 0.0 }
 0x2f8   : > { %v1286_v59 = vmax.f32 %v1228_v53, 0.0 }
 0x2f9   : > { %v1284_v61 = vmax.f32 %v1220_v55, 0.0 }
 0x2fa   : > { %v1306_v62 = vpack.c.bf16 %v1286_v59, %v1285_v57 }
 0x2fb   : > { %v1305_v38 = vpack.c.bf16 %v1284_v61, %v1283_v60  ;;  %v2311_v63 = vpop.f32.mrb[28].mxu1 }
 0x2fc   : > { %v1241_v0 = vadd.f32 %v2311_v63, %v3029_v49  ;;  %v1232_v1 = vpop.f32.mrb[29].mxu1 }
 0x2fd   : > { %v1233_v39 = vadd.f32 %v3029_v49, %v1232_v1  ;;  %v2312_v3 = vpop.f32.mrb[30].mxu1  ;;  %2353 = vmatprep.mubr.bf16.mxu0 %v1305_v38 }
 0x2fe   : > { %v1244_v4 = vadd.f32 %v2312_v3, %v3029_v49  ;;  %v1235_v6 = vpop.f32.mrb[31].mxu1  ;;  %2354 = vmatmul.mubr.bf16.gmra.mrb[56].mxu0 %v1306_v62  ;;  %v1289_v8 = vmax.f32 %v1241_v0, 0.0 }
 0x2ff   : > { %v1236_v7 = vadd.f32 %v3029_v49, %v1235_v6  ;;  %v1287_v10 = vmax.f32 %v1233_v39, 0.0 }
 0x300   : > { %v1290_v9 = vmax.f32 %v1244_v4, 0.0 }
 0x301   : > { %v1288_v11 = vmax.f32 %v1236_v7, 0.0 }
 0x302   : > { %v1308_v12 = vpack.c.bf16 %v1290_v9, %v1289_v8 }
 0x303   : > { %v1307_v43 = vpack.c.bf16 %v1288_v11, %v1287_v10  ;;  %v2315_v13 = vpop.f32.mrb[32].mxu1 }
 0x304   : > { %v1257_v14 = vadd.f32 %v2315_v13, %v3029_v49  ;;  %v1248_v15 = vpop.f32.mrb[33].mxu1 }
 0x305   : > { %v1249_v16 = vadd.f32 %v3029_v49, %v1248_v15  ;;  %v2316_v17 = vpop.f32.mrb[34].mxu1  ;;  %2357 = vmatprep.mubr.bf16.mxu0 %v1307_v43 }
 0x306   : > { %v1260_v18 = vadd.f32 %v2316_v17, %v3029_v49  ;;  %v1251_v19 = vpop.f32.mrb[35].mxu1  ;;  %2358 = vmatmul.mubr.bf16.gmra.mrb[60].mxu0 %v1308_v12  ;;  %v1293_v20 = vmax.f32 %v1257_v14, 0.0 }
 0x307   : > { %v1252_v40 = vadd.f32 %v3029_v49, %v1251_v19  ;;  %v1291_v22 = vmax.f32 %v1249_v16, 0.0  ;;  %v2525_v49 = vld [vmem:[%s3256_s2 + $0x60] ss:$36 sps:$4 sm:$0xff]  }
 0x308   : > { %v1294_v21 = vmax.f32 %v1260_v18, 0.0  ;;  %2368 = vmatpush3.bf16.msra.mxu1 %v2525_v49 }
 0x309   : > { %v1292_v41 = vmax.f32 %v1252_v40, 0.0  ;;  %2369 = vmatprep.subr.bf16.mxu1 %v2612_v2 }
 0x30a   : > { %v1310_v24 = vpack.c.bf16 %v1294_v21, %v1293_v20 }
 0x30b   : > { %v1309_v27 = vpack.c.bf16 %v1292_v41, %v1291_v22 }
 0x30c   : > { %2370 = vmatpush3.bf16.msra.mxu1 %v2526_v25 }
 0x30d   : > { %2361 = vmatprep.mubr.bf16.mxu0 %v1309_v27  ;;  %2371 = vmatprep.subr.bf16.mxu1 %v2612_v2 }
 0x30e   : > { %2362 = vmatmul.mubr.bf16.gmra.mrb[64].mxu0 %v1310_v24 }
 0x30f   : > { %2421 = vmatprep.mubr.msk.bf16.mxu0 %vm2614_vm0, %v2612_v2 }
 0x310   : > { %2372 = vmatpush3.bf16.msra.mxu1 %v2527_v29 }
 0x311   : > { %2373 = vmatprep.subr.bf16.mxu1 %v2612_v2 }
 0x314   : > { %2374 = vmatpush3.bf16.msra.mxu1 %v2528_v31 }
 0x315   : > { %2375 = vmatprep.subr.bf16.mxu1 %v2612_v2 }
 0x318   : > { %2376 = vmatpush3.bf16.msra.mxu1 %v2529_v32 }
 0x319   : > { %2377 = vmatprep.subr.bf16.mxu1 %v2612_v2 }
 0x31c   : > { %2378 = vmatpush3.bf16.msra.mxu1 %v2530_v44 }
 0x31d   : > { %2379 = vmatprep.subr.bf16.mxu1 %v2612_v2 }
 0x320   : > { %2380 = vmatpush3.bf16.msra.mxu1 %v2531_v33 }
 0x321   : > { %2385 = vmatprep.subr.bf16.mxu1 %v2612_v2 }
 0x3a9   : > { %v2335_v35 = vpop.f32.mrb[36].mxu0 }
 0x3aa   : > { %v1414_v58 = vpop.f32.mrb[37].mxu0  ;;  %v1423_v26 = vadd.f32 %v2335_v35, %v3100_v34 }
 0x3ab   : > { %v1415_v30 = vadd.f32 %v3100_v34, %v1414_v58  ;;  %v2336_v37 = vpop.f32.mrb[38].mxu0 }
 0x3ac   : > { %v1417_v36 = vpop.f32.mrb[39].mxu0  ;;  %v1426_v5 = vadd.f32 %v2336_v37, %v3100_v34  ;;  %v1543_v23 = vmax.f32 %v1423_v26, 0.0 }
 0x3ad   : > { %v1418_v51 = vadd.f32 %v3100_v34, %v1417_v36  ;;  %v1541_v56 = vmax.f32 %v1415_v30, 0.0 }
 0x3ae   : > { %v1544_v45 = vmax.f32 %v1426_v5, 0.0 }
 0x3af   : > { %v1542_v46 = vmax.f32 %v1418_v51, 0.0 }
 0x3b1   : > { %v1573_v47 = vadd.f32 %v1542_v46, %v1541_v56  ;;  %v2339_v48 = vpop.f32.mrb[40].mxu0 }
 0x3b2   : > { %v1430_v42 = vpop.f32.mrb[41].mxu0  ;;  %v1439_v55 = vadd.f32 %v2339_v48, %v3100_v34 }
 0x3b3   : > { %v1574_v50 = vadd.f32 %v1573_v47, %v1543_v23  ;;  %v1431_v52 = vadd.f32 %v3100_v34, %v1430_v42  ;;  %v2340_v53 = vpop.f32.mrb[42].mxu0 }
 0x3b4   : > { %v1433_v54 = vpop.f32.mrb[43].mxu0  ;;  %v1442_v62 = vadd.f32 %v2340_v53, %v3100_v34  ;;  %v1547_v63 = vmax.f32 %v1439_v55, 0.0 }
 0x3b5   : > { %v1545_v57 = vmax.f32 %v1431_v52, 0.0  ;;  %v1575_v59 = vadd.f32 %v1574_v50, %v1544_v45  ;;  %v1434_v60 = vadd.f32 %v3100_v34, %v1433_v54 }
 0x3b6   : > { %v1548_v3 = vmax.f32 %v1442_v62, 0.0 }
 0x3b7   : > { %v1576_v61 = vadd.f32 %v1575_v59, %v1545_v57  ;;  %v1546_v38 = vmax.f32 %v1434_v60, 0.0 }
 0x3b9   : > { %v1577_v0 = vadd.f32 %v1576_v61, %v1546_v38  ;;  %v2343_v1 = vpop.f32.mrb[44].mxu0 }
 0x3ba   : > { %v1446_v39 = vpop.f32.mrb[45].mxu0  ;;  %v1455_v9 = vadd.f32 %v2343_v1, %v3100_v34 }
 0x3bb   : > { %v1578_v4 = vadd.f32 %v1577_v0, %v1547_v63  ;;  %v1447_v6 = vadd.f32 %v3100_v34, %v1446_v39  ;;  %v2344_v7 = vpop.f32.mrb[46].mxu0 }
 0x3bc   : > { %v1449_v8 = vpop.f32.mrb[47].mxu0  ;;  %v1458_v13 = vadd.f32 %v2344_v7, %v3100_v34  ;;  %v1551_v15 = vmax.f32 %v1455_v9, 0.0 }
 0x3bd   : > { %v1549_v10 = vmax.f32 %v1447_v6, 0.0  ;;  %v1579_v11 = vadd.f32 %v1578_v4, %v1548_v3  ;;  %v1450_v12 = vadd.f32 %v3100_v34, %v1449_v8 }
 0x3be   : > { %v1552_v19 = vmax.f32 %v1458_v13, 0.0 }
 0x3bf   : > { %v1580_v43 = vadd.f32 %v1579_v11, %v1549_v10  ;;  %v1550_v14 = vmax.f32 %v1450_v12, 0.0 }
 0x3c1   : > { %v1581_v16 = vadd.f32 %v1580_v43, %v1550_v14  ;;  %v2347_v17 = vpop.f32.mrb[48].mxu0 }
 0x3c2   : > { %v1462_v18 = vpop.f32.mrb[49].mxu0  ;;  %v1471_v41 = vadd.f32 %v2347_v17, %v3100_v34 }
 0x3c3   : > { %v1582_v40 = vadd.f32 %v1581_v16, %v1551_v15  ;;  %v1463_v20 = vadd.f32 %v3100_v34, %v1462_v18  ;;  %v2348_v21 = vpop.f32.mrb[50].mxu0 }
 0x3c4   : > { %v1465_v22 = vpop.f32.mrb[51].mxu0  ;;  %v1474_v25 = vadd.f32 %v2348_v21, %v3100_v34  ;;  %v1555_v31 = vmax.f32 %v1471_v41, 0.0 }
 0x3c5   : > { %v1553_v24 = vmax.f32 %v1463_v20, 0.0  ;;  %v1583_v27 = vadd.f32 %v1582_v40, %v1552_v19  ;;  %v1466_v28 = vadd.f32 %v3100_v34, %v1465_v22 }
 0x3c6   : > { %v1556_v35 = vmax.f32 %v1474_v25, 0.0 }
 0x3c7   : > { %v1584_v49 = vadd.f32 %v1583_v27, %v1553_v24  ;;  %v1554_v29 = vmax.f32 %v1466_v28, 0.0 }
 0x3c9   : > { %v1585_v32 = vadd.f32 %v1584_v49, %v1554_v29  ;;  %v2351_v44 = vpop.f32.mrb[52].mxu0 }
 0x3ca   : > { %v1478_v33 = vpop.f32.mrb[53].mxu0  ;;  %v1487_v26 = vadd.f32 %v2351_v44, %v3100_v34 }
 0x3cb   : > { %v1586_v58 = vadd.f32 %v1585_v32, %v1555_v31  ;;  %v1479_v30 = vadd.f32 %v3100_v34, %v1478_v33  ;;  %v2352_v37 = vpop.f32.mrb[54].mxu0 }
 0x3cc   : > { %v1481_v36 = vpop.f32.mrb[55].mxu0  ;;  %v1490_v23 = vadd.f32 %v2352_v37, %v3100_v34  ;;  %v1559_v48 = vmax.f32 %v1487_v26, 0.0 }
 0x3cd   : > { %v1557_v51 = vmax.f32 %v1479_v30, 0.0  ;;  %v1587_v56 = vadd.f32 %v1586_v58, %v1556_v35  ;;  %v1482_v5 = vadd.f32 %v3100_v34, %v1481_v36 }
 0x3ce   : > { %v1560_v52 = vmax.f32 %v1490_v23, 0.0 }
 0x3cf   : > { %v1588_v46 = vadd.f32 %v1587_v56, %v1557_v51  ;;  %v1558_v47 = vmax.f32 %v1482_v5, 0.0 }
 0x3d1   : > { %v1589_v42 = vadd.f32 %v1588_v46, %v1558_v47  ;;  %v2355_v45 = vpop.f32.mrb[56].mxu0  ;;  %v2532_v46 = vld [vmem:[%s3256_s2 + $0x1c] ss:$36 sps:$4 sm:$0xff]   ;;  %v2534_v47 = vld [vmem:[%s3256_s2 + $0xac] ss:$36 sps:$4 sm:$0xff]  }
 0x3d2   : > { %v1494_v50 = vpop.f32.mrb[57].mxu0  ;;  %v1503_v59 = vadd.f32 %v2355_v45, %v3100_v34  ;;  %v2537_v45 = vld [vmem:[%s3256_s2 + $0x184] ss:$36 sps:$4 sm:$0xff]  }
 0x3d3   : > { %v1590_v53 = vadd.f32 %v1589_v42, %v1559_v48  ;;  %v1495_v54 = vadd.f32 %v3100_v34, %v1494_v50  ;;  %v2356_v55 = vpop.f32.mrb[58].mxu0  ;;  %v2535_v48 = vld [vmem:[%s3256_s2 + $0xf4] ss:$36 sps:$4 sm:$0xff]   ;;  %v2536_v42 = vld [vmem:[%s3256_s2 + $0x13c] ss:$36 sps:$4 sm:$0xff]  }
 0x3d4   : > { %v1497_v57 = vpop.f32.mrb[59].mxu0  ;;  %v1506_v63 = vadd.f32 %v2356_v55, %v3100_v34  ;;  %v1563_v1 = vmax.f32 %v1503_v59, 0.0  ;;  %v2538_v50 = vld [vmem:[%s3256_s2 + $0x1cc] ss:$36 sps:$4 sm:$0xff]   ;;  %v2544_v59 = vld [vmem:[%s3256_s2 + $0x140] ss:$36 sps:$4 sm:$0xff]  }
 0x3d5   : > { %v1561_v60 = vmax.f32 %v1495_v54, 0.0  ;;  %v1591_v61 = vadd.f32 %v1590_v53, %v1560_v52  ;;  %v1498_v62 = vadd.f32 %v3100_v34, %v1497_v57  ;;  %v2539_v52 = vld [vmem:[%s3256_s2 + $0x214] ss:$36 sps:$4 sm:$0xff]   ;;  %v2540_v53 = vld [vmem:[%s3256_s2 + $0x20] ss:$36 sps:$4 sm:$0xff]  }
 0x3d6   : > { %v1564_v6 = vmax.f32 %v1506_v63, 0.0  ;;  %2406 = vmatpush3.bf16.msra.mxu0 %v2540_v53  ;;  %v2541_v54 = vld [vmem:[%s3256_s2 + $0x68] ss:$36 sps:$4 sm:$0xff]   ;;  %v2542_v55 = vld [vmem:[%s3256_s2 + $0xb0] ss:$36 sps:$4 sm:$0xff]  }
 0x3d7   : > { %v1592_v38 = vadd.f32 %v1591_v61, %v1561_v60  ;;  %v1562_v0 = vmax.f32 %v1498_v62, 0.0  ;;  %2407 = vmatprep.subr.bf16.mxu0 %v2612_v2  ;;  %v2543_v57 = vld [vmem:[%s3256_s2 + $0xf8] ss:$36 sps:$4 sm:$0xff]   ;;  %v2545_v60 = vld [vmem:[%s3256_s2 + $0x188] ss:$36 sps:$4 sm:$0xff]  }
 0x3d8   : > { %v2546_v61 = vld [vmem:[%s3256_s2 + $0x1d0] ss:$36 sps:$4 sm:$0xff]   ;;  %v2547_v62 = vld [vmem:[%s3256_s2 + $0x218] ss:$36 sps:$4 sm:$0xff]  }
 0x3d9   : > { %v1593_v39 = vadd.f32 %v1592_v38, %v1562_v0  ;;  %v2359_v3 = vpop.f32.mrb[60].mxu0  ;;  %v1627_v38 = vld [vmem:[%s3257_s3 + $0x4] sm:$0x1] }
 0x3da   : > { %v1510_v4 = vpop.f32.mrb[61].mxu0  ;;  %v1519_v11 = vadd.f32 %v2359_v3, %v3100_v34  ;;  %2408 = vmatpush3.bf16.msra.mxu0 %v2541_v54 }
 0x3db   : > { %v1594_v7 = vadd.f32 %v1593_v39, %v1563_v1  ;;  %v1511_v8 = vadd.f32 %v3100_v34, %v1510_v4  ;;  %v2360_v9 = vpop.f32.mrb[62].mxu0  ;;  %2409 = vmatprep.subr.bf16.mxu0 %v2612_v2 }
 0x3dc   : > { %v1513_v10 = vpop.f32.mrb[63].mxu0  ;;  %v1522_v15 = vadd.f32 %v2360_v9, %v3100_v34  ;;  %v1567_v17 = vmax.f32 %v1519_v11, 0.0 }
 0x3dd   : > { %v1565_v12 = vmax.f32 %v1511_v8, 0.0  ;;  %v1595_v43 = vadd.f32 %v1594_v7, %v1564_v6  ;;  %v1514_v13 = vadd.f32 %v3100_v34, %v1513_v10  ;;  %v1734_v7 = vld [vmem:[%s3257_s3 + $0x5] sm:$0x1] }
 0x3de   : > { %v1568_v20 = vmax.f32 %v1522_v15, 0.0  ;;  %2410 = vmatpush3.bf16.msra.mxu0 %v2542_v55 }
 0x3df   : > { %v1596_v14 = vadd.f32 %v1595_v43, %v1565_v12  ;;  %v1566_v16 = vmax.f32 %v1514_v13, 0.0  ;;  %2411 = vmatprep.subr.bf16.mxu0 %v2612_v2  ;;  %v1841_v13 = vld [vmem:[%s3257_s3 + $0x6] sm:$0x1] }
 0x3e1   : > { %v1597_v18 = vadd.f32 %v1596_v14, %v1566_v16  ;;  %v2363_v19 = vpop.f32.mrb[64].mxu0 }
 0x3e2   : > { %v1526_v40 = vpop.f32.mrb[65].mxu0  ;;  %v1535_v27 = vadd.f32 %v2363_v19, %v3100_v34  ;;  %2412 = vmatpush3.bf16.msra.mxu0 %v2543_v57 }
 0x3e3   : > { %v1598_v21 = vadd.f32 %v1597_v18, %v1567_v17  ;;  %v1527_v22 = vadd.f32 %v3100_v34, %v1526_v40  ;;  %v2364_v41 = vpop.f32.mrb[66].mxu0  ;;  %2413 = vmatprep.subr.bf16.mxu0 %v2612_v2 }
 0x3e4   : > { %v1529_v24 = vpop.f32.mrb[67].mxu0  ;;  %v1538_v31 = vadd.f32 %v2364_v41, %v3100_v34  ;;  %v1571_v44 = vmax.f32 %v1535_v27, 0.0 }
 0x3e5   : > { %v1569_v28 = vmax.f32 %v1527_v22, 0.0  ;;  %v1599_v49 = vadd.f32 %v1598_v21, %v1568_v20  ;;  %v1530_v25 = vadd.f32 %v3100_v34, %v1529_v24  ;;  %v2533_v34 = vld [vmem:[%s3256_s2 + $0x64] ss:$36 sps:$4 sm:$0xff]  }
 0x3e6   : > { %v1572_v35 = vmax.f32 %v1538_v31, 0.0  ;;  %2414 = vmatpush3.bf16.msra.mxu0 %v2544_v59 }
 0x3e7   : > { %v1600_v29 = vadd.f32 %v1599_v49, %v1569_v28  ;;  %v1570_v32 = vmax.f32 %v1530_v25, 0.0  ;;  %2415 = vmatprep.subr.bf16.mxu0 %v2612_v2 }
 0x3e9   : > { %v1601_v33 = vadd.f32 %v1600_v29, %v1570_v32 }
 0x3ea   : > { %2416 = vmatpush3.bf16.msra.mxu0 %v2545_v60 }
 0x3eb   : > { %v1602_v58 = vadd.f32 %v1601_v33, %v1571_v44  ;;  %2417 = vmatprep.subr.bf16.mxu0 %v2612_v2 }
 0x3ed   : > { %v1603_v30 = vadd.f32 %v1602_v58, %v1572_v35 }
 0x3ee   : > { %2418 = vmatpush3.bf16.msra.mxu0 %v2546_v61 }
 0x3ef   : > { %v1604_v37 = vrot.slane %v1603_v30, 4  ;;  %2419 = vmatprep.subr.bf16.mxu0 %v2612_v2 }
 0x3f1   : > { %v1605_v36 = vadd.f32 %v1604_v37, %v1603_v30 }
 0x3f2   : > { %2420 = vmatpush3.bf16.msra.mxu0 %v2547_v62 }
 0x3f3   : > { %v1606_v26 = vrot.slane %v1605_v36, 2 }
 0x3f5   : > { %v1607_v51 = vadd.f32 %v1606_v26, %v1605_v36 }
 0x3f7   : > { %v1608_v56 = vrot.slane %v1607_v51, 1 }
 0x3f9   : > { %v1609_v5 = vadd.f32 %v1608_v56, %v1607_v51 }
 0x3fb   : > { %v1610_v23 = vpack.c.bf16 %v1609_v5, %v1609_v5 }
 0x3fd   : > { %2382 = vmatmul.mubr.bf16.vlgmr.msra.gmra.mrb[36].mxu1 %v1610_v23 }
 0x3fe   : > { %2386 = vmatpush3.bf16.msra.mxu1 %v2532_v46  ;;  %2401 = vmatprep.mubr.msk.bf16.mxu1 %vm2614_vm0, %v2612_v2 }
 0x3ff   : > { %2387 = vmatprep.subr.bf16.mxu1 %v2612_v2 }
 0x402   : > { %2388 = vmatpush3.bf16.msra.mxu1 %v2533_v34 }
 0x403   : > { %2389 = vmatprep.subr.bf16.mxu1 %v2612_v2 }
 0x406   : > { %2390 = vmatpush3.bf16.msra.mxu1 %v2534_v47 }
 0x407   : > { %2391 = vmatprep.subr.bf16.mxu1 %v2612_v2 }
 0x40a   : > { %2392 = vmatpush3.bf16.msra.mxu1 %v2535_v48 }
 0x40b   : > { %2393 = vmatprep.subr.bf16.mxu1 %v2612_v2 }
 0x40e   : > { %2394 = vmatpush3.bf16.msra.mxu1 %v2536_v42 }
 0x40f   : > { %2395 = vmatprep.subr.bf16.mxu1 %v2612_v2 }
 0x412   : > { %2396 = vmatpush3.bf16.msra.mxu1 %v2537_v45 }
 0x413   : > { %2397 = vmatprep.subr.bf16.mxu1 %v2612_v2 }
 0x416   : > { %2398 = vmatpush3.bf16.msra.mxu1 %v2538_v50 }
 0x417   : > { %2399 = vmatprep.subr.bf16.mxu1 %v2612_v2 }
 0x41a   : > { %2400 = vmatpush3.bf16.msra.mxu1 %v2539_v52 }
 0x4d0   : > { %v1710_v63 = vpop.f32.mrb[36].mxu1 }
 0x4d1   : > { %v1711_v0 = vadd.f32 %v1710_v63, %v1627_v38  ;;  %v2383_v1 = vpop.f32.mrb[37].mxu1 }
 0x4d2   : > { %v1713_v39 = vpop.f32.mrb[38].mxu1 }
 0x4d3   : > { %v1716_v3 = vmax.f32 %v1711_v0, 0.0  ;;  %v2384_v4 = vpop.f32.mrb[39].mxu1 }
 0x4d5   : > { %v1717_v6 = vpack.c.bf16 %v1716_v3, %v1716_v3 }
 0x4d7   : > { %2402 = vmatmul.mubr.bf16.vlgmr.msra.gmra.mrb[40].mxu1 %v1717_v6 }
 0x5aa   : > { %v1817_v2 = vpop.f32.mrb[40].mxu1 }
 0x5ab   : > { %v1818_v8 = vadd.f32 %v1817_v2, %v1734_v7  ;;  %v2403_v9 = vpop.f32.mrb[41].mxu1 }
 0x5ac   : > { %v1820_v10 = vpop.f32.mrb[42].mxu1 }
 0x5ad   : > { %v1823_v11 = vmax.f32 %v1818_v8, 0.0  ;;  %v2404_v12 = vpop.f32.mrb[43].mxu1 }
 0x5af   : > { %v1824_v43 = vpack.c.bf16 %v1823_v11, %v1823_v11 }
 0x5b1   : > { %2422 = vmatmul.mubr.bf16.vlgmr.msra.gmra.mrb[68].mxu0 %v1824_v43 }
 0x684   : > { %v1924_v14 = vpop.f32.mrb[68].mxu0 }
 0x685   : > { %v1925_v15 = vadd.f32 %v1924_v14, %v1841_v13  ;;  %v2423_v16 = vpop.f32.mrb[69].mxu0 }
 0x686   : > { %v1927_v17 = vpop.f32.mrb[70].mxu0 }
 0x687   : > { %1930 = vst [vmem:[%s200_s27] sm:$0x1] %v1925_v15  ;;  %v2424_v18 = vpop.f32.mrb[71].mxu0 }
 0x688   : > { %2561 = shalt.err (!%p2558_p3)
}
 0x689   : > { %s2562_s10 = scalar_lea.hbm %s3212_s5, 16  ;;  %s2566_s12 = scalar_lea.hbm %s3258_s4, 32 }
 0x68a   : > { %p2563_p4 = scmp.ne.s32.totalorder %s3212_s5, %s2562_s10  ;;  %p2567_p9 = scmp.lt.u32.totalorder %s3212_s5, %s3258_s4 }
 0x68b   : > { %p2568_p10 = scmp.lt.u32.totalorder %s2566_s12, %s2562_s10  ;;  %p2570_p12 = scmp.lt.u32.totalorder %s2562_s10, %s3212_s5 }
 0x68c   : > { %p2564_p7 = pnand %p2563_p4, %p2680_p5 }
 0x68d   : > { %p2569_p11 = por %p2568_p10, %p2567_p9 }
 0x68e   : > { %p2565_p8 = pneg %p2564_p7 }
 0x68f   : > { %p2571_p13 = por %p2570_p12, %p2569_p11 }
 0x691   : > { %p2572_p0 = pnand %p2571_p13, %p2565_p8 }
 0x693   : > { %2575 = shalt.err (!%p2572_p0)
}
 0x694   : > { %2425 = dma.vmem_to_hbm [thread:$0]  (%p2680_p5), %s3214_s28, 16, %s3212_s5, %s1932_s23  }
 0x695 PF: > { %p2431_p1 = scmp.ge.s32.totalorder %s2610_s18, 2  ;;  %s1956_s20 = sand.u32 1, %s2598_s15  }
 0x696   : > { %s1957_s22 = scalar_lea.sflag [#allocation3], %s1956_s20 }
 0x697   : > { %p2428_p2 = pnand %p2431_p1, %p2684_p6 }
 0x699   : > { %2593 = dma.done.wait (!%p2428_p2), %s1957_s22, 16  }
 0x69a   : > { %2595 = vsyncadd (!%p2428_p2), %s1957_s22, 4294967280  ;;  %p14_p3 = scmp.ge.s32.totalorder %s2667_s21, 4   ;;  %s3261_s15 = smov %s2602_s16 }
 0x69b   : > { %s3262_s16 = smov %s2606_s17  ;;  %s3263_s17 = smov %s2678_s24 }
 0x69c   : > { %s3264_s18 = smov %s2667_s21  ;;  %16 = sbr.rel (!%p14_p3) target bundleno = 3 (0x3), region = 74 }
 0x6a3   :  { %1961 = vsyncpa [#allocation3], 1 }
 0x6a4   :  { %1963 = vsyncpa [#allocation3 + $0x1], 1 }

</bundles_post_ra>
